<compile_context>
chip_gen: v5e
topology: v5e:2x2
jax: 0.10.0
libtpu: 0.0.40
codegen_flags: <defaults>
</compile_context>

<pallas_src>
import functools
import math

import jax
import jax.numpy as jnp
from jax.experimental import pallas as pl
from jax.experimental.pallas import tpu as pltpu


# ----------------------------------------------------------------------------
# helpers (run inside the kernel)
# ----------------------------------------------------------------------------
def _layer_norm(x, g, b, eps):
    mu = jnp.mean(x, axis=-1, keepdims=True)
    var = jnp.mean((x - mu) ** 2, axis=-1, keepdims=True)
    return (x - mu) * jax.lax.rsqrt(var + eps) * g + b


def _attention(xq, xkv, w, mask, nhead):
    """Multi-head attention on VMEM-resident (T, D) query / (S, D) key-value.

    Per-head Q/K/V come from static *weight-column* slices (activations stay
    lane-dense), and the output projection is accumulated per head from static
    *row* slices of Wo — no per-head activation relayout, no scratch concat.
    """
    wq_ref, bq_ref, wk_ref, bk_ref, wv_ref, bv_ref, wo_ref, bo_ref = w
    D = wq_ref.shape[0]
    hd = D // nhead
    xq16 = xq.astype(jnp.bfloat16)
    xkv16 = xkv.astype(jnp.bfloat16)
    qk_dims = (((1,), (1,)), ((), ()))       # q @ k^T without explicit transpose
    out = None
    for h in range(nhead):                   # static, unrolled
        cols = slice(h * hd, (h + 1) * hd)
        qh = jnp.dot(xq16, wq_ref[:, cols],
                     preferred_element_type=jnp.float32) + bq_ref[:, cols]
        kh = jnp.dot(xkv16, wk_ref[:, cols],
                     preferred_element_type=jnp.float32) + bk_ref[:, cols]
        vh = jnp.dot(xkv16, wv_ref[:, cols],
                     preferred_element_type=jnp.float32) + bv_ref[:, cols]
        s = jax.lax.dot_general(qh.astype(jnp.bfloat16), kh.astype(jnp.bfloat16),
                                dimension_numbers=qk_dims,
                                preferred_element_type=jnp.float32)
        if mask is not None:                 # additive mask, f32
            s = s + mask
        s = s - jnp.max(s, axis=-1, keepdims=True)
        p = jnp.exp(s)
        p = p * pl.reciprocal(jnp.sum(p, axis=-1, keepdims=True), approx=True)
        oh = jnp.dot(p.astype(jnp.bfloat16), vh.astype(jnp.bfloat16),
                     preferred_element_type=jnp.float32)
        contrib = jnp.dot(oh.astype(jnp.bfloat16), wo_ref[cols, :],
                          preferred_element_type=jnp.float32)
        out = contrib if out is None else out + contrib
    return out + bo_ref[...]


# ----------------------------------------------------------------------------
# Fused decoder-layer kernel: one grid point = one (stream, batch) element
# ----------------------------------------------------------------------------
def _make_layer_kernel(nhead, eps, has_mask):
    def kernel(*refs):
        it = iter(refs)
        tgt_ref = next(it)                        # (1, 1, T, D) raw stream input
        kv_ref = next(it)                         # (1, T, D)  raw content (self-attn KV source)
        mem_ref = next(it)                        # (1, S_mem, D) memory (already LN'd by ViT)
        mask_ref = next(it) if has_mask else None  # (1, T, T) additive f32
        gq_ref = next(it); bq_ln_ref = next(it)   # (1, 1, D) per-stream q-path LN (norm_q / norm_c)
        gc_ref = next(it); bc_ref = next(it)      # (1, D) norm_c (KV path)
        g1_ref = next(it); b1_ref = next(it)      # (1, D) norm1
        g2_ref = next(it); b2_ref = next(it)      # (1, D) norm2
        sa_w = [next(it) for _ in range(8)]       # self-attn  wq,bq,wk,bk,wv,bv,wo,bo
        ca_w = [next(it) for _ in range(8)]       # cross-attn wq,bq,wk,bk,wv,bv,wo,bo
        w1_ref = next(it); fb1_ref = next(it)     # (D, F) bf16, (1, F) f32
        w2_ref = next(it); fb2_ref = next(it)     # (F, D) bf16, (1, D) f32
        o_ref = next(it)                          # (1, 1, T, D)

        tgt = tgt_ref[0, 0]                       # (T, D) f32 residual stream
        content = kv_ref[0]                       # (T, D)
        memory = mem_ref[0]                       # (S_mem, D)
        mask = mask_ref[0] if has_mask else None

        # ---- self attention: LN_{q|c}(tgt) attends to LN_c(content) ----
        xq = _layer_norm(tgt, gq_ref[0], bq_ln_ref[0], eps)
        xkv = _layer_norm(content, gc_ref[...], bc_ref[...], eps)
        tgt = tgt + _attention(xq, xkv, sa_w, mask, nhead)     # dropout1 = identity

        # ---- cross attention: norm1(tgt) attends to memory ----
        x1 = _layer_norm(tgt, g1_ref[...], b1_ref[...], eps)
        tgt = tgt + _attention(x1, memory, ca_w, None, nhead)  # dropout2 = identity

        # ---- FFN: norm2 -> linear1 -> GELU (exact erf) -> linear2 ----
        x2 = _layer_norm(tgt, g2_ref[...], b2_ref[...], eps)
        h = jnp.dot(x2.astype(jnp.bfloat16), w1_ref[...],
                    preferred_element_type=jnp.float32) + fb1_ref[...]
        h = 0.5 * h * (1.0 + jax.lax.erf(h * (1.0 / math.sqrt(2.0))))
        y = jnp.dot(h.astype(jnp.bfloat16), w2_ref[...],
                    preferred_element_type=jnp.float32) + fb2_ref[...]
        o_ref[0, 0] = tgt + y                     # dropout3 = identity

    return kernel


# ----------------------------------------------------------------------------
# DecoderLayer forward (single pallas_call)
# ----------------------------------------------------------------------------
def decoder_layer_forward(params, query, content, memory, nhead,
                          query_mask=None, content_mask=None,
                          update_content=True, eps=1e-5):
    # TODO(synk): key_padding_mask and the per-stream attention-weight outputs
    # (sa_weights/ca_weights) are not wired up; forward() only needs (query, content).
    B, T, D = query.shape
    S_mem = memory.shape[1]
    hd = D // nhead
    scale = 1.0 / math.sqrt(hd)
    f32 = jnp.float32
    n_streams = 2 if update_content else 1

    # --- stack both streams onto one leading parallel axis ---
    if update_content:
        tgt = jnp.stack([query, content], axis=0)                       # (2, B, T, D)
        gq = jnp.stack([params["norm_q"]["g"], params["norm_c"]["g"]])[:, None, :]
        bq_ln = jnp.stack([params["norm_q"]["b"], params["norm_c"]["b"]])[:, None, :]
    else:
        tgt = query[None]                                               # (1, B, T, D)
        gq = params["norm_q"]["g"][None, None, :]
        bq_ln = params["norm_q"]["b"][None, None, :]

    has_mask = (query_mask is not None) or (update_content and content_mask is not None)
    if has_mask:
        zero = jnp.zeros((T, T), f32)
        masks = [zero if query_mask is None else query_mask.astype(f32)]
        if update_content:
            masks.append(zero if content_mask is None else content_mask.astype(f32))
        mask_stacked = jnp.stack(masks, axis=0)                         # (n_streams, T, T)

    def attn_arrays(p):
        # fold 1/sqrt(head_dim) into the Q projection; bf16 MXU weights, f32 biases
        return [
            (p["wq"] * scale).astype(jnp.bfloat16), (p["bq"] * scale).reshape(1, D).astype(f32),
            p["wk"].astype(jnp.bfloat16), p["bk"].reshape(1, D).astype(f32),
            p["wv"].astype(jnp.bfloat16), p["bv"].reshape(1, D).astype(f32),
            p["wo"].astype(jnp.bfloat16), p["bo"].reshape(1, D).astype(f32),
        ]

    F_ = params["ffn"]["w1"].shape[1]
    const_arrays = (
        [params["norm_c"]["g"].reshape(1, D), params["norm_c"]["b"].reshape(1, D),
         params["norm1"]["g"].reshape(1, D), params["norm1"]["b"].reshape(1, D),
         params["norm2"]["g"].reshape(1, D), params["norm2"]["b"].reshape(1, D)]
        + attn_arrays(params["self_attn"])
        + attn_arrays(params["cross_attn"])
        + [params["ffn"]["w1"].astype(jnp.bfloat16),
           params["ffn"]["b1"].reshape(1, F_).astype(f32),
           params["ffn"]["w2"].astype(jnp.bfloat16),
           params["ffn"]["b2"].reshape(1, D).astype(f32)]
    )

    # --- assemble inputs / specs ---
    in_arrays = [tgt, content, memory]
    in_specs = [
        pl.BlockSpec((1, 1, T, D), lambda s, b: (s, b, 0, 0)),
        pl.BlockSpec((1, T, D), lambda s, b: (b, 0, 0)),
        pl.BlockSpec((1, S_mem, D), lambda s, b: (b, 0, 0)),
    ]
    if has_mask:
        in_arrays.append(mask_stacked)
        in_specs.append(pl.BlockSpec((1, T, T), lambda s, b: (s, 0, 0)))

    in_arrays += [gq, bq_ln]
    in_specs += [pl.BlockSpec((1, 1, D), lambda s, b: (s, 0, 0)),
                 pl.BlockSpec((1, 1, D), lambda s, b: (s, 0, 0))]

    def const_spec(arr):
        nd = arr.ndim
        return pl.BlockSpec(arr.shape, lambda s, b, _nd=nd: (0,) * _nd)

    in_arrays += list(const_arrays)
    in_specs += [const_spec(a) for a in const_arrays]

    # --- explicit VMEM budget (covers v5e 16 MiB default / v7x 64 MiB physical) ---
    def _nbytes(shape, itemsize):
        n = 1
        for d in shape:
            n *= int(d)
        return n * itemsize

    blk_bytes = 3 * _nbytes((T, D), 4) + _nbytes((S_mem, D), 4)   # tgt + content + out, memory
    if has_mask:
        blk_bytes += _nbytes((T, T), 4)
    blk_bytes += 2 * _nbytes((1, D), 4)                           # per-stream LN blocks
    for a in const_arrays:
        blk_bytes += _nbytes(a.shape, a.dtype.itemsize)
    needed = 2 * blk_bytes + (4 << 20)                            # double buffering + slack
    vmem_limit = int(max(needed, 32 << 20)) if needed <= (64 << 20) else int(needed)

    out = pl.pallas_call(
        _make_layer_kernel(nhead=nhead, eps=eps, has_mask=has_mask),
        out_shape=jax.ShapeDtypeStruct((n_streams, B, T, D), f32),
        grid=(n_streams, B),
        in_specs=in_specs,
        out_specs=pl.BlockSpec((1, 1, T, D), lambda s, b: (s, b, 0, 0)),
        compiler_params=pltpu.CompilerParams(
            dimension_semantics=("parallel", "parallel"),
            vmem_limit_bytes=vmem_limit),
    )(*in_arrays)

    query_out = out[0]
    content_out = out[1] if update_content else content
    return query_out, content_out


# ----------------------------------------------------------------------------
# Deterministic parameter init
# ----------------------------------------------------------------------------
def init_params(key, d_model, nhead, dim_feedforward):
    ks = iter(jax.random.split(key, 32))
    std = 0.02

    def W(shape):
        return jax.random.normal(next(ks), shape, jnp.float32) * std

    def attn_params():
        return {
            "wq": W((d_model, d_model)), "bq": jnp.zeros((d_model,), jnp.float32),
            "wk": W((d_model, d_model)), "bk": jnp.zeros((d_model,), jnp.float32),
            "wv": W((d_model, d_model)), "bv": jnp.zeros((d_model,), jnp.float32),
            "wo": W((d_model, d_model)), "bo": jnp.zeros((d_model,), jnp.float32),
        }

    def ln_params():
        return {"g": jnp.ones((d_model,), jnp.float32),
                "b": jnp.zeros((d_model,), jnp.float32)}

    return {
        "self_attn": attn_params(),
        "cross_attn": attn_params(),
        "ffn": {
            "w1": W((d_model, dim_feedforward)),
            "b1": jnp.zeros((dim_feedforward,), jnp.float32),
            "w2": W((dim_feedforward, d_model)),
            "b2": jnp.zeros((d_model,), jnp.float32),
        },
        "norm1": ln_params(), "norm2": ln_params(),
        "norm_q": ln_params(), "norm_c": ln_params(),
    }


if __name__ == "__main__":
    B, T, S_mem = 2, 8, 16            # batch, target seq len, memory seq len
    d_model, nhead, dim_ff = 32, 4, 64

    key = jax.random.PRNGKey(0)
    k_q, k_c, k_m, k_p = jax.random.split(key, 4)
    query = jax.random.normal(k_q, (B, T, d_model), jnp.float32)
    content = jax.random.normal(k_c, (B, T, d_model), jnp.float32)
    memory = jax.random.normal(k_m, (B, S_mem, d_model), jnp.float32)
    params = init_params(k_p, d_model, nhead, dim_ff)

    # causal additive mask for the content stream (large negative above diagonal)
    neg_inf = jnp.float32(-1e30)
    content_mask = jnp.where(
        jnp.triu(jnp.ones((T, T), jnp.bool_), k=1), neg_inf, jnp.float32(0.0))

    fwd = jax.jit(functools.partial(decoder_layer_forward, nhead=nhead,
                                    update_content=True))
    q_out, c_out = fwd(params, query, content, memory,
                       query_mask=None, content_mask=content_mask)
    jax.block_until_ready((q_out, c_out))
    assert q_out.shape == (B, T, d_model) and c_out.shape == (B, T, d_model)
    assert bool(jnp.all(jnp.isfinite(q_out))) and bool(jnp.all(jnp.isfinite(c_out)))
    print("KERNEL_OK")
</pallas_src>

<mosaic_0001>
module attributes {stable_mosaic.version = 11 : i64} {
  func.func @kernel(%arg0: i32, %arg1: i32, %arg2: memref<1x1x8x32xf32, #tpu.memory_space<vmem>>, %arg3: memref<1x8x32xf32, #tpu.memory_space<vmem>>, %arg4: memref<1x16x32xf32, #tpu.memory_space<vmem>>, %arg5: memref<1x8x8xf32, #tpu.memory_space<vmem>>, %arg6: memref<1x1x32xf32, #tpu.memory_space<vmem>>, %arg7: memref<1x1x32xf32, #tpu.memory_space<vmem>>, %arg8: memref<1x32xf32, #tpu.memory_space<vmem>>, %arg9: memref<1x32xf32, #tpu.memory_space<vmem>>, %arg10: memref<1x32xf32, #tpu.memory_space<vmem>>, %arg11: memref<1x32xf32, #tpu.memory_space<vmem>>, %arg12: memref<1x32xf32, #tpu.memory_space<vmem>>, %arg13: memref<1x32xf32, #tpu.memory_space<vmem>>, %arg14: memref<32x32xbf16, #tpu.memory_space<vmem>>, %arg15: memref<1x32xf32, #tpu.memory_space<vmem>>, %arg16: memref<32x32xbf16, #tpu.memory_space<vmem>>, %arg17: memref<1x32xf32, #tpu.memory_space<vmem>>, %arg18: memref<32x32xbf16, #tpu.memory_space<vmem>>, %arg19: memref<1x32xf32, #tpu.memory_space<vmem>>, %arg20: memref<32x32xbf16, #tpu.memory_space<vmem>>, %arg21: memref<1x32xf32, #tpu.memory_space<vmem>>, %arg22: memref<32x32xbf16, #tpu.memory_space<vmem>>, %arg23: memref<1x32xf32, #tpu.memory_space<vmem>>, %arg24: memref<32x32xbf16, #tpu.memory_space<vmem>>, %arg25: memref<1x32xf32, #tpu.memory_space<vmem>>, %arg26: memref<32x32xbf16, #tpu.memory_space<vmem>>, %arg27: memref<1x32xf32, #tpu.memory_space<vmem>>, %arg28: memref<32x32xbf16, #tpu.memory_space<vmem>>, %arg29: memref<1x32xf32, #tpu.memory_space<vmem>>, %arg30: memref<32x64xbf16, #tpu.memory_space<vmem>>, %arg31: memref<1x64xf32, #tpu.memory_space<vmem>>, %arg32: memref<64x32xbf16, #tpu.memory_space<vmem>>, %arg33: memref<1x32xf32, #tpu.memory_space<vmem>>, %arg34: memref<1x1x8x32xf32, #tpu.memory_space<vmem>>) attributes {dimension_semantics = [#tpu.dimension_semantics<parallel>, #tpu.dimension_semantics<parallel>], iteration_bounds = array<i64: 2, 2>, scalar_prefetch = 0 : i64, scratch_operands = 0 : i64, tpu.core_type = #tpu.core_type<tc>, window_params = [{transform_indices = @transform_0, window_bounds = array<i64: 1, 1, 8, 32>}, {transform_indices = @transform_1, window_bounds = array<i64: 1, 8, 32>}, {transform_indices = @transform_2, window_bounds = array<i64: 1, 16, 32>}, {transform_indices = @transform_3, window_bounds = array<i64: 1, 8, 8>}, {transform_indices = @transform_4, window_bounds = array<i64: 1, 1, 32>}, {transform_indices = @transform_5, window_bounds = array<i64: 1, 1, 32>}, {pipeline_mode = #tpu.pipeline_mode<synchronous>, transform_indices = @transform_6, window_bounds = array<i64: 1, 32>}, {pipeline_mode = #tpu.pipeline_mode<synchronous>, transform_indices = @transform_7, window_bounds = array<i64: 1, 32>}, {pipeline_mode = #tpu.pipeline_mode<synchronous>, transform_indices = @transform_8, window_bounds = array<i64: 1, 32>}, {pipeline_mode = #tpu.pipeline_mode<synchronous>, transform_indices = @transform_9, window_bounds = array<i64: 1, 32>}, {pipeline_mode = #tpu.pipeline_mode<synchronous>, transform_indices = @transform_10, window_bounds = array<i64: 1, 32>}, {pipeline_mode = #tpu.pipeline_mode<synchronous>, transform_indices = @transform_11, window_bounds = array<i64: 1, 32>}, {pipeline_mode = #tpu.pipeline_mode<synchronous>, transform_indices = @transform_12, window_bounds = array<i64: 32, 32>}, {pipeline_mode = #tpu.pipeline_mode<synchronous>, transform_indices = @transform_13, window_bounds = array<i64: 1, 32>}, {pipeline_mode = #tpu.pipeline_mode<synchronous>, transform_indices = @transform_14, window_bounds = array<i64: 32, 32>}, {pipeline_mode = #tpu.pipeline_mode<synchronous>, transform_indices = @transform_15, window_bounds = array<i64: 1, 32>}, {pipeline_mode = #tpu.pipeline_mode<synchronous>, transform_indices = @transform_16, window_bounds = array<i64: 32, 32>}, {pipeline_mode = #tpu.pipeline_mode<synchronous>, transform_indices = @transform_17, window_bounds = array<i64: 1, 32>}, {pipeline_mode = #tpu.pipeline_mode<synchronous>, transform_indices = @transform_18, window_bounds = array<i64: 32, 32>}, {pipeline_mode = #tpu.pipeline_mode<synchronous>, transform_indices = @transform_19, window_bounds = array<i64: 1, 32>}, {pipeline_mode = #tpu.pipeline_mode<synchronous>, transform_indices = @transform_20, window_bounds = array<i64: 32, 32>}, {pipeline_mode = #tpu.pipeline_mode<synchronous>, transform_indices = @transform_21, window_bounds = array<i64: 1, 32>}, {pipeline_mode = #tpu.pipeline_mode<synchronous>, transform_indices = @transform_22, window_bounds = array<i64: 32, 32>}, {pipeline_mode = #tpu.pipeline_mode<synchronous>, transform_indices = @transform_23, window_bounds = array<i64: 1, 32>}, {pipeline_mode = #tpu.pipeline_mode<synchronous>, transform_indices = @transform_24, window_bounds = array<i64: 32, 32>}, {pipeline_mode = #tpu.pipeline_mode<synchronous>, transform_indices = @transform_25, window_bounds = array<i64: 1, 32>}, {pipeline_mode = #tpu.pipeline_mode<synchronous>, transform_indices = @transform_26, window_bounds = array<i64: 32, 32>}, {pipeline_mode = #tpu.pipeline_mode<synchronous>, transform_indices = @transform_27, window_bounds = array<i64: 1, 32>}, {pipeline_mode = #tpu.pipeline_mode<synchronous>, transform_indices = @transform_28, window_bounds = array<i64: 32, 64>}, {pipeline_mode = #tpu.pipeline_mode<synchronous>, transform_indices = @transform_29, window_bounds = array<i64: 1, 64>}, {pipeline_mode = #tpu.pipeline_mode<synchronous>, transform_indices = @transform_30, window_bounds = array<i64: 64, 32>}, {pipeline_mode = #tpu.pipeline_mode<synchronous>, transform_indices = @transform_31, window_bounds = array<i64: 1, 32>}, {transform_indices = @transform_32, window_bounds = array<i64: 1, 1, 8, 32>}]} {
    %c0 = arith.constant 0 : index
    %c0_0 = arith.constant 0 : index
    %c0_1 = arith.constant 0 : index
    %c0_2 = arith.constant 0 : index
    %0 = vector.load %arg2[%c0, %c0_0, %c0_1, %c0_2] : memref<1x1x8x32xf32, #tpu.memory_space<vmem>>, vector<1x1x8x32xf32>
    %1 = vector.shape_cast %0 : vector<1x1x8x32xf32> to vector<8x32xf32>
    %c0_3 = arith.constant 0 : index
    %c0_4 = arith.constant 0 : index
    %c0_5 = arith.constant 0 : index
    %2 = vector.load %arg3[%c0_3, %c0_4, %c0_5] : memref<1x8x32xf32, #tpu.memory_space<vmem>>, vector<1x8x32xf32>
    %3 = vector.shape_cast %2 : vector<1x8x32xf32> to vector<8x32xf32>
    %c0_6 = arith.constant 0 : index
    %c0_7 = arith.constant 0 : index
    %c0_8 = arith.constant 0 : index
    %4 = vector.load %arg4[%c0_6, %c0_7, %c0_8] : memref<1x16x32xf32, #tpu.memory_space<vmem>>, vector<1x16x32xf32>
    %5 = vector.shape_cast %4 : vector<1x16x32xf32> to vector<16x32xf32>
    %c0_9 = arith.constant 0 : index
    %c0_10 = arith.constant 0 : index
    %c0_11 = arith.constant 0 : index
    %6 = vector.load %arg5[%c0_9, %c0_10, %c0_11] : memref<1x8x8xf32, #tpu.memory_space<vmem>>, vector<1x8x8xf32>
    %7 = vector.shape_cast %6 : vector<1x8x8xf32> to vector<8x8xf32>
    %c0_12 = arith.constant 0 : index
    %c0_13 = arith.constant 0 : index
    %c0_14 = arith.constant 0 : index
    %8 = vector.load %arg6[%c0_12, %c0_13, %c0_14] : memref<1x1x32xf32, #tpu.memory_space<vmem>>, vector<1x1x32xf32>
    %9 = vector.shape_cast %8 : vector<1x1x32xf32> to vector<1x32xf32>
    %c0_15 = arith.constant 0 : index
    %c0_16 = arith.constant 0 : index
    %c0_17 = arith.constant 0 : index
    %10 = vector.load %arg7[%c0_15, %c0_16, %c0_17] : memref<1x1x32xf32, #tpu.memory_space<vmem>>, vector<1x1x32xf32>
    %11 = vector.shape_cast %10 : vector<1x1x32xf32> to vector<1x32xf32>
    %cst = arith.constant dense<0.000000e+00> : vector<8xf32>
    %12 = vector.multi_reduction <add>, %1, %cst [1] : vector<8x32xf32> to vector<8xf32>
    %13 = vector.shape_cast %12 : vector<8xf32> to vector<8x1xf32>
    %cst_18 = arith.constant 3.200000e+01 : f32
    %14 = vector.broadcast %cst_18 : f32 to vector<8x1xf32>
    %15 = arith.divf %13, %14 : vector<8x1xf32>
    %16 = vector.broadcast %15 : vector<8x1xf32> to vector<8x32xf32>
    %17 = arith.subf %1, %16 : vector<8x32xf32>
    %18 = arith.mulf %17, %17 : vector<8x32xf32>
    %cst_19 = arith.constant dense<0.000000e+00> : vector<8xf32>
    %19 = vector.multi_reduction <add>, %18, %cst_19 [1] : vector<8x32xf32> to vector<8xf32>
    %20 = vector.shape_cast %19 : vector<8xf32> to vector<8x1xf32>
    %cst_20 = arith.constant 3.200000e+01 : f32
    %21 = vector.broadcast %cst_20 : f32 to vector<8x1xf32>
    %22 = arith.divf %20, %21 : vector<8x1xf32>
    %23 = vector.broadcast %15 : vector<8x1xf32> to vector<8x32xf32>
    %24 = arith.subf %1, %23 : vector<8x32xf32>
    %cst_21 = arith.constant 9.99999974E-6 : f32
    %25 = vector.broadcast %cst_21 : f32 to vector<8x1xf32>
    %26 = arith.addf %22, %25 : vector<8x1xf32>
    %27 = math.rsqrt %26 : vector<8x1xf32>
    %28 = vector.broadcast %27 : vector<8x1xf32> to vector<8x32xf32>
    %29 = arith.mulf %24, %28 : vector<8x32xf32>
    %30 = vector.broadcast %9 : vector<1x32xf32> to vector<8x32xf32>
    %31 = arith.mulf %29, %30 : vector<8x32xf32>
    %32 = vector.broadcast %11 : vector<1x32xf32> to vector<8x32xf32>
    %33 = arith.addf %31, %32 : vector<8x32xf32>
    %c0_22 = arith.constant 0 : index
    %c0_23 = arith.constant 0 : index
    %34 = vector.load %arg8[%c0_22, %c0_23] : memref<1x32xf32, #tpu.memory_space<vmem>>, vector<1x32xf32>
    %c0_24 = arith.constant 0 : index
    %c0_25 = arith.constant 0 : index
    %35 = vector.load %arg9[%c0_24, %c0_25] : memref<1x32xf32, #tpu.memory_space<vmem>>, vector<1x32xf32>
    %cst_26 = arith.constant dense<0.000000e+00> : vector<8xf32>
    %36 = vector.multi_reduction <add>, %3, %cst_26 [1] : vector<8x32xf32> to vector<8xf32>
    %37 = vector.shape_cast %36 : vector<8xf32> to vector<8x1xf32>
    %cst_27 = arith.constant 3.200000e+01 : f32
    %38 = vector.broadcast %cst_27 : f32 to vector<8x1xf32>
    %39 = arith.divf %37, %38 : vector<8x1xf32>
    %40 = vector.broadcast %39 : vector<8x1xf32> to vector<8x32xf32>
    %41 = arith.subf %3, %40 : vector<8x32xf32>
    %42 = arith.mulf %41, %41 : vector<8x32xf32>
    %cst_28 = arith.constant dense<0.000000e+00> : vector<8xf32>
    %43 = vector.multi_reduction <add>, %42, %cst_28 [1] : vector<8x32xf32> to vector<8xf32>
    %44 = vector.shape_cast %43 : vector<8xf32> to vector<8x1xf32>
    %cst_29 = arith.constant 3.200000e+01 : f32
    %45 = vector.broadcast %cst_29 : f32 to vector<8x1xf32>
    %46 = arith.divf %44, %45 : vector<8x1xf32>
    %47 = vector.broadcast %39 : vector<8x1xf32> to vector<8x32xf32>
    %48 = arith.subf %3, %47 : vector<8x32xf32>
    %cst_30 = arith.constant 9.99999974E-6 : f32
    %49 = vector.broadcast %cst_30 : f32 to vector<8x1xf32>
    %50 = arith.addf %46, %49 : vector<8x1xf32>
    %51 = math.rsqrt %50 : vector<8x1xf32>
    %52 = vector.broadcast %51 : vector<8x1xf32> to vector<8x32xf32>
    %53 = arith.mulf %48, %52 : vector<8x32xf32>
    %54 = vector.broadcast %34 : vector<1x32xf32> to vector<8x32xf32>
    %55 = arith.mulf %53, %54 : vector<8x32xf32>
    %56 = vector.broadcast %35 : vector<1x32xf32> to vector<8x32xf32>
    %57 = arith.addf %55, %56 : vector<8x32xf32>
    %58 = arith.truncf %33 : vector<8x32xf32> to vector<8x32xbf16>
    %59 = arith.truncf %57 : vector<8x32xf32> to vector<8x32xbf16>
    %c0_31 = arith.constant 0 : index
    %c0_32 = arith.constant 0 : index
    %60 = vector.load %arg14[%c0_31, %c0_32] : memref<32x32xbf16, #tpu.memory_space<vmem>>, vector<32x8xbf16>
    %cst_33 = arith.constant dense<0.000000e+00> : vector<8x8xf32>
    %61 = tpu.matmul %58, %60, %cst_33 {dimension_numbers = #tpu.dot_dimension_numbers<[1], [0], [0], [1], [0, 0, 1, 1], [], []>} : vector<8x32xbf16>, vector<32x8xbf16>, vector<8x8xf32> -> vector<8x8xf32>
    %c0_34 = arith.constant 0 : index
    %c0_35 = arith.constant 0 : index
    %62 = vector.load %arg15[%c0_34, %c0_35] : memref<1x32xf32, #tpu.memory_space<vmem>>, vector<1x8xf32>
    %63 = vector.broadcast %62 : vector<1x8xf32> to vector<8x8xf32>
    %64 = arith.addf %61, %63 : vector<8x8xf32>
    %c0_36 = arith.constant 0 : index
    %c0_37 = arith.constant 0 : index
    %65 = vector.load %arg16[%c0_36, %c0_37] : memref<32x32xbf16, #tpu.memory_space<vmem>>, vector<32x8xbf16>
    %cst_38 = arith.constant dense<0.000000e+00> : vector<8x8xf32>
    %66 = tpu.matmul %59, %65, %cst_38 {dimension_numbers = #tpu.dot_dimension_numbers<[1], [0], [0], [1], [0, 0, 1, 1], [], []>} : vector<8x32xbf16>, vector<32x8xbf16>, vector<8x8xf32> -> vector<8x8xf32>
    %c0_39 = arith.constant 0 : index
    %c0_40 = arith.constant 0 : index
    %67 = vector.load %arg17[%c0_39, %c0_40] : memref<1x32xf32, #tpu.memory_space<vmem>>, vector<1x8xf32>
    %68 = vector.broadcast %67 : vector<1x8xf32> to vector<8x8xf32>
    %69 = arith.addf %66, %68 : vector<8x8xf32>
    %c0_41 = arith.constant 0 : index
    %c0_42 = arith.constant 0 : index
    %70 = vector.load %arg18[%c0_41, %c0_42] : memref<32x32xbf16, #tpu.memory_space<vmem>>, vector<32x8xbf16>
    %cst_43 = arith.constant dense<0.000000e+00> : vector<8x8xf32>
    %71 = tpu.matmul %59, %70, %cst_43 {dimension_numbers = #tpu.dot_dimension_numbers<[1], [0], [0], [1], [0, 0, 1, 1], [], []>} : vector<8x32xbf16>, vector<32x8xbf16>, vector<8x8xf32> -> vector<8x8xf32>
    %c0_44 = arith.constant 0 : index
    %c0_45 = arith.constant 0 : index
    %72 = vector.load %arg19[%c0_44, %c0_45] : memref<1x32xf32, #tpu.memory_space<vmem>>, vector<1x8xf32>
    %73 = vector.broadcast %72 : vector<1x8xf32> to vector<8x8xf32>
    %74 = arith.addf %71, %73 : vector<8x8xf32>
    %75 = arith.truncf %64 : vector<8x8xf32> to vector<8x8xbf16>
    %76 = arith.truncf %69 : vector<8x8xf32> to vector<8x8xbf16>
    %cst_46 = arith.constant dense<0.000000e+00> : vector<8x8xf32>
    %77 = tpu.matmul %75, %76, %cst_46 {dimension_numbers = #tpu.dot_dimension_numbers<[1], [1], [0], [0], [0, 0, 1, 0], [], []>} : vector<8x8xbf16>, vector<8x8xbf16>, vector<8x8xf32> -> vector<8x8xf32>
    %78 = arith.addf %77, %7 : vector<8x8xf32>
    %cst_47 = arith.constant dense<0xFF800000> : vector<8xf32>
    %79 = vector.multi_reduction <maximumf>, %78, %cst_47 [1] : vector<8x8xf32> to vector<8xf32>
    %80 = vector.shape_cast %79 : vector<8xf32> to vector<8x1xf32>
    %81 = vector.broadcast %80 : vector<8x1xf32> to vector<8x8xf32>
    %82 = arith.subf %78, %81 : vector<8x8xf32>
    %83 = math.exp %82 : vector<8x8xf32>
    %cst_48 = arith.constant dense<0.000000e+00> : vector<8xf32>
    %84 = vector.multi_reduction <add>, %83, %cst_48 [1] : vector<8x8xf32> to vector<8xf32>
    %85 = vector.shape_cast %84 : vector<8xf32> to vector<8x1xf32>
    %86 = tpu.reciprocal %85 {approx = true} : vector<8x1xf32> -> vector<8x1xf32>
    %87 = vector.broadcast %86 : vector<8x1xf32> to vector<8x8xf32>
    %88 = arith.mulf %83, %87 : vector<8x8xf32>
    %89 = arith.truncf %88 : vector<8x8xf32> to vector<8x8xbf16>
    %90 = arith.truncf %74 : vector<8x8xf32> to vector<8x8xbf16>
    %cst_49 = arith.constant dense<0.000000e+00> : vector<8x8xf32>
    %91 = tpu.matmul %89, %90, %cst_49 {dimension_numbers = #tpu.dot_dimension_numbers<[1], [0], [0], [1], [0, 0, 1, 1], [], []>} : vector<8x8xbf16>, vector<8x8xbf16>, vector<8x8xf32> -> vector<8x8xf32>
    %92 = arith.truncf %91 : vector<8x8xf32> to vector<8x8xbf16>
    %c0_50 = arith.constant 0 : index
    %c0_51 = arith.constant 0 : index
    %93 = vector.load %arg20[%c0_50, %c0_51] : memref<32x32xbf16, #tpu.memory_space<vmem>>, vector<8x32xbf16>
    %cst_52 = arith.constant dense<0.000000e+00> : vector<8x32xf32>
    %94 = tpu.matmul %92, %93, %cst_52 {dimension_numbers = #tpu.dot_dimension_numbers<[1], [0], [0], [1], [0, 0, 1, 1], [], []>} : vector<8x8xbf16>, vector<8x32xbf16>, vector<8x32xf32> -> vector<8x32xf32>
    %c0_53 = arith.constant 0 : index
    %c8 = arith.constant 8 : index
    %95 = vector.load %arg14[%c0_53, %c8] : memref<32x32xbf16, #tpu.memory_space<vmem>>, vector<32x8xbf16>
    %cst_54 = arith.constant dense<0.000000e+00> : vector<8x8xf32>
    %96 = tpu.matmul %58, %95, %cst_54 {dimension_numbers = #tpu.dot_dimension_numbers<[1], [0], [0], [1], [0, 0, 1, 1], [], []>} : vector<8x32xbf16>, vector<32x8xbf16>, vector<8x8xf32> -> vector<8x8xf32>
    %c0_55 = arith.constant 0 : index
    %c8_56 = arith.constant 8 : index
    %97 = vector.load %arg15[%c0_55, %c8_56] : memref<1x32xf32, #tpu.memory_space<vmem>>, vector<1x8xf32>
    %98 = vector.broadcast %97 : vector<1x8xf32> to vector<8x8xf32>
    %99 = arith.addf %96, %98 : vector<8x8xf32>
    %c0_57 = arith.constant 0 : index
    %c8_58 = arith.constant 8 : index
    %100 = vector.load %arg16[%c0_57, %c8_58] : memref<32x32xbf16, #tpu.memory_space<vmem>>, vector<32x8xbf16>
    %cst_59 = arith.constant dense<0.000000e+00> : vector<8x8xf32>
    %101 = tpu.matmul %59, %100, %cst_59 {dimension_numbers = #tpu.dot_dimension_numbers<[1], [0], [0], [1], [0, 0, 1, 1], [], []>} : vector<8x32xbf16>, vector<32x8xbf16>, vector<8x8xf32> -> vector<8x8xf32>
    %c0_60 = arith.constant 0 : index
    %c8_61 = arith.constant 8 : index
    %102 = vector.load %arg17[%c0_60, %c8_61] : memref<1x32xf32, #tpu.memory_space<vmem>>, vector<1x8xf32>
    %103 = vector.broadcast %102 : vector<1x8xf32> to vector<8x8xf32>
    %104 = arith.addf %101, %103 : vector<8x8xf32>
    %c0_62 = arith.constant 0 : index
    %c8_63 = arith.constant 8 : index
    %105 = vector.load %arg18[%c0_62, %c8_63] : memref<32x32xbf16, #tpu.memory_space<vmem>>, vector<32x8xbf16>
    %cst_64 = arith.constant dense<0.000000e+00> : vector<8x8xf32>
    %106 = tpu.matmul %59, %105, %cst_64 {dimension_numbers = #tpu.dot_dimension_numbers<[1], [0], [0], [1], [0, 0, 1, 1], [], []>} : vector<8x32xbf16>, vector<32x8xbf16>, vector<8x8xf32> -> vector<8x8xf32>
    %c0_65 = arith.constant 0 : index
    %c8_66 = arith.constant 8 : index
    %107 = vector.load %arg19[%c0_65, %c8_66] : memref<1x32xf32, #tpu.memory_space<vmem>>, vector<1x8xf32>
    %108 = vector.broadcast %107 : vector<1x8xf32> to vector<8x8xf32>
    %109 = arith.addf %106, %108 : vector<8x8xf32>
    %110 = arith.truncf %99 : vector<8x8xf32> to vector<8x8xbf16>
    %111 = arith.truncf %104 : vector<8x8xf32> to vector<8x8xbf16>
    %cst_67 = arith.constant dense<0.000000e+00> : vector<8x8xf32>
    %112 = tpu.matmul %110, %111, %cst_67 {dimension_numbers = #tpu.dot_dimension_numbers<[1], [1], [0], [0], [0, 0, 1, 0], [], []>} : vector<8x8xbf16>, vector<8x8xbf16>, vector<8x8xf32> -> vector<8x8xf32>
    %113 = arith.addf %112, %7 : vector<8x8xf32>
    %cst_68 = arith.constant dense<0xFF800000> : vector<8xf32>
    %114 = vector.multi_reduction <maximumf>, %113, %cst_68 [1] : vector<8x8xf32> to vector<8xf32>
    %115 = vector.shape_cast %114 : vector<8xf32> to vector<8x1xf32>
    %116 = vector.broadcast %115 : vector<8x1xf32> to vector<8x8xf32>
    %117 = arith.subf %113, %116 : vector<8x8xf32>
    %118 = math.exp %117 : vector<8x8xf32>
    %cst_69 = arith.constant dense<0.000000e+00> : vector<8xf32>
    %119 = vector.multi_reduction <add>, %118, %cst_69 [1] : vector<8x8xf32> to vector<8xf32>
    %120 = vector.shape_cast %119 : vector<8xf32> to vector<8x1xf32>
    %121 = tpu.reciprocal %120 {approx = true} : vector<8x1xf32> -> vector<8x1xf32>
    %122 = vector.broadcast %121 : vector<8x1xf32> to vector<8x8xf32>
    %123 = arith.mulf %118, %122 : vector<8x8xf32>
    %124 = arith.truncf %123 : vector<8x8xf32> to vector<8x8xbf16>
    %125 = arith.truncf %109 : vector<8x8xf32> to vector<8x8xbf16>
    %cst_70 = arith.constant dense<0.000000e+00> : vector<8x8xf32>
    %126 = tpu.matmul %124, %125, %cst_70 {dimension_numbers = #tpu.dot_dimension_numbers<[1], [0], [0], [1], [0, 0, 1, 1], [], []>} : vector<8x8xbf16>, vector<8x8xbf16>, vector<8x8xf32> -> vector<8x8xf32>
    %127 = arith.truncf %126 : vector<8x8xf32> to vector<8x8xbf16>
    %c8_71 = arith.constant 8 : index
    %c0_72 = arith.constant 0 : index
    %128 = vector.load %arg20[%c8_71, %c0_72] : memref<32x32xbf16, #tpu.memory_space<vmem>>, vector<8x32xbf16>
    %cst_73 = arith.constant dense<0.000000e+00> : vector<8x32xf32>
    %129 = tpu.matmul %127, %128, %cst_73 {dimension_numbers = #tpu.dot_dimension_numbers<[1], [0], [0], [1], [0, 0, 1, 1], [], []>} : vector<8x8xbf16>, vector<8x32xbf16>, vector<8x32xf32> -> vector<8x32xf32>
    %130 = arith.addf %94, %129 : vector<8x32xf32>
    %c0_74 = arith.constant 0 : index
    %c16 = arith.constant 16 : index
    %131 = vector.load %arg14[%c0_74, %c16] : memref<32x32xbf16, #tpu.memory_space<vmem>>, vector<32x8xbf16>
    %cst_75 = arith.constant dense<0.000000e+00> : vector<8x8xf32>
    %132 = tpu.matmul %58, %131, %cst_75 {dimension_numbers = #tpu.dot_dimension_numbers<[1], [0], [0], [1], [0, 0, 1, 1], [], []>} : vector<8x32xbf16>, vector<32x8xbf16>, vector<8x8xf32> -> vector<8x8xf32>
    %c0_76 = arith.constant 0 : index
    %c16_77 = arith.constant 16 : index
    %133 = vector.load %arg15[%c0_76, %c16_77] : memref<1x32xf32, #tpu.memory_space<vmem>>, vector<1x8xf32>
    %134 = vector.broadcast %133 : vector<1x8xf32> to vector<8x8xf32>
    %135 = arith.addf %132, %134 : vector<8x8xf32>
    %c0_78 = arith.constant 0 : index
    %c16_79 = arith.constant 16 : index
    %136 = vector.load %arg16[%c0_78, %c16_79] : memref<32x32xbf16, #tpu.memory_space<vmem>>, vector<32x8xbf16>
    %cst_80 = arith.constant dense<0.000000e+00> : vector<8x8xf32>
    %137 = tpu.matmul %59, %136, %cst_80 {dimension_numbers = #tpu.dot_dimension_numbers<[1], [0], [0], [1], [0, 0, 1, 1], [], []>} : vector<8x32xbf16>, vector<32x8xbf16>, vector<8x8xf32> -> vector<8x8xf32>
    %c0_81 = arith.constant 0 : index
    %c16_82 = arith.constant 16 : index
    %138 = vector.load %arg17[%c0_81, %c16_82] : memref<1x32xf32, #tpu.memory_space<vmem>>, vector<1x8xf32>
    %139 = vector.broadcast %138 : vector<1x8xf32> to vector<8x8xf32>
    %140 = arith.addf %137, %139 : vector<8x8xf32>
    %c0_83 = arith.constant 0 : index
    %c16_84 = arith.constant 16 : index
    %141 = vector.load %arg18[%c0_83, %c16_84] : memref<32x32xbf16, #tpu.memory_space<vmem>>, vector<32x8xbf16>
    %cst_85 = arith.constant dense<0.000000e+00> : vector<8x8xf32>
    %142 = tpu.matmul %59, %141, %cst_85 {dimension_numbers = #tpu.dot_dimension_numbers<[1], [0], [0], [1], [0, 0, 1, 1], [], []>} : vector<8x32xbf16>, vector<32x8xbf16>, vector<8x8xf32> -> vector<8x8xf32>
    %c0_86 = arith.constant 0 : index
    %c16_87 = arith.constant 16 : index
    %143 = vector.load %arg19[%c0_86, %c16_87] : memref<1x32xf32, #tpu.memory_space<vmem>>, vector<1x8xf32>
    %144 = vector.broadcast %143 : vector<1x8xf32> to vector<8x8xf32>
    %145 = arith.addf %142, %144 : vector<8x8xf32>
    %146 = arith.truncf %135 : vector<8x8xf32> to vector<8x8xbf16>
    %147 = arith.truncf %140 : vector<8x8xf32> to vector<8x8xbf16>
    %cst_88 = arith.constant dense<0.000000e+00> : vector<8x8xf32>
    %148 = tpu.matmul %146, %147, %cst_88 {dimension_numbers = #tpu.dot_dimension_numbers<[1], [1], [0], [0], [0, 0, 1, 0], [], []>} : vector<8x8xbf16>, vector<8x8xbf16>, vector<8x8xf32> -> vector<8x8xf32>
    %149 = arith.addf %148, %7 : vector<8x8xf32>
    %cst_89 = arith.constant dense<0xFF800000> : vector<8xf32>
    %150 = vector.multi_reduction <maximumf>, %149, %cst_89 [1] : vector<8x8xf32> to vector<8xf32>
    %151 = vector.shape_cast %150 : vector<8xf32> to vector<8x1xf32>
    %152 = vector.broadcast %151 : vector<8x1xf32> to vector<8x8xf32>
    %153 = arith.subf %149, %152 : vector<8x8xf32>
    %154 = math.exp %153 : vector<8x8xf32>
    %cst_90 = arith.constant dense<0.000000e+00> : vector<8xf32>
    %155 = vector.multi_reduction <add>, %154, %cst_90 [1] : vector<8x8xf32> to vector<8xf32>
    %156 = vector.shape_cast %155 : vector<8xf32> to vector<8x1xf32>
    %157 = tpu.reciprocal %156 {approx = true} : vector<8x1xf32> -> vector<8x1xf32>
    %158 = vector.broadcast %157 : vector<8x1xf32> to vector<8x8xf32>
    %159 = arith.mulf %154, %158 : vector<8x8xf32>
    %160 = arith.truncf %159 : vector<8x8xf32> to vector<8x8xbf16>
    %161 = arith.truncf %145 : vector<8x8xf32> to vector<8x8xbf16>
    %cst_91 = arith.constant dense<0.000000e+00> : vector<8x8xf32>
    %162 = tpu.matmul %160, %161, %cst_91 {dimension_numbers = #tpu.dot_dimension_numbers<[1], [0], [0], [1], [0, 0, 1, 1], [], []>} : vector<8x8xbf16>, vector<8x8xbf16>, vector<8x8xf32> -> vector<8x8xf32>
    %163 = arith.truncf %162 : vector<8x8xf32> to vector<8x8xbf16>
    %c16_92 = arith.constant 16 : index
    %c0_93 = arith.constant 0 : index
    %164 = vector.load %arg20[%c16_92, %c0_93] : memref<32x32xbf16, #tpu.memory_space<vmem>>, vector<8x32xbf16>
    %cst_94 = arith.constant dense<0.000000e+00> : vector<8x32xf32>
    %165 = tpu.matmul %163, %164, %cst_94 {dimension_numbers = #tpu.dot_dimension_numbers<[1], [0], [0], [1], [0, 0, 1, 1], [], []>} : vector<8x8xbf16>, vector<8x32xbf16>, vector<8x32xf32> -> vector<8x32xf32>
    %166 = arith.addf %130, %165 : vector<8x32xf32>
    %c0_95 = arith.constant 0 : index
    %c24 = arith.constant 24 : index
    %167 = vector.load %arg14[%c0_95, %c24] : memref<32x32xbf16, #tpu.memory_space<vmem>>, vector<32x8xbf16>
    %cst_96 = arith.constant dense<0.000000e+00> : vector<8x8xf32>
    %168 = tpu.matmul %58, %167, %cst_96 {dimension_numbers = #tpu.dot_dimension_numbers<[1], [0], [0], [1], [0, 0, 1, 1], [], []>} : vector<8x32xbf16>, vector<32x8xbf16>, vector<8x8xf32> -> vector<8x8xf32>
    %c0_97 = arith.constant 0 : index
    %c24_98 = arith.constant 24 : index
    %169 = vector.load %arg15[%c0_97, %c24_98] : memref<1x32xf32, #tpu.memory_space<vmem>>, vector<1x8xf32>
    %170 = vector.broadcast %169 : vector<1x8xf32> to vector<8x8xf32>
    %171 = arith.addf %168, %170 : vector<8x8xf32>
    %c0_99 = arith.constant 0 : index
    %c24_100 = arith.constant 24 : index
    %172 = vector.load %arg16[%c0_99, %c24_100] : memref<32x32xbf16, #tpu.memory_space<vmem>>, vector<32x8xbf16>
    %cst_101 = arith.constant dense<0.000000e+00> : vector<8x8xf32>
    %173 = tpu.matmul %59, %172, %cst_101 {dimension_numbers = #tpu.dot_dimension_numbers<[1], [0], [0], [1], [0, 0, 1, 1], [], []>} : vector<8x32xbf16>, vector<32x8xbf16>, vector<8x8xf32> -> vector<8x8xf32>
    %c0_102 = arith.constant 0 : index
    %c24_103 = arith.constant 24 : index
    %174 = vector.load %arg17[%c0_102, %c24_103] : memref<1x32xf32, #tpu.memory_space<vmem>>, vector<1x8xf32>
    %175 = vector.broadcast %174 : vector<1x8xf32> to vector<8x8xf32>
    %176 = arith.addf %173, %175 : vector<8x8xf32>
    %c0_104 = arith.constant 0 : index
    %c24_105 = arith.constant 24 : index
    %177 = vector.load %arg18[%c0_104, %c24_105] : memref<32x32xbf16, #tpu.memory_space<vmem>>, vector<32x8xbf16>
    %cst_106 = arith.constant dense<0.000000e+00> : vector<8x8xf32>
    %178 = tpu.matmul %59, %177, %cst_106 {dimension_numbers = #tpu.dot_dimension_numbers<[1], [0], [0], [1], [0, 0, 1, 1], [], []>} : vector<8x32xbf16>, vector<32x8xbf16>, vector<8x8xf32> -> vector<8x8xf32>
    %c0_107 = arith.constant 0 : index
    %c24_108 = arith.constant 24 : index
    %179 = vector.load %arg19[%c0_107, %c24_108] : memref<1x32xf32, #tpu.memory_space<vmem>>, vector<1x8xf32>
    %180 = vector.broadcast %179 : vector<1x8xf32> to vector<8x8xf32>
    %181 = arith.addf %178, %180 : vector<8x8xf32>
    %182 = arith.truncf %171 : vector<8x8xf32> to vector<8x8xbf16>
    %183 = arith.truncf %176 : vector<8x8xf32> to vector<8x8xbf16>
    %cst_109 = arith.constant dense<0.000000e+00> : vector<8x8xf32>
    %184 = tpu.matmul %182, %183, %cst_109 {dimension_numbers = #tpu.dot_dimension_numbers<[1], [1], [0], [0], [0, 0, 1, 0], [], []>} : vector<8x8xbf16>, vector<8x8xbf16>, vector<8x8xf32> -> vector<8x8xf32>
    %185 = arith.addf %184, %7 : vector<8x8xf32>
    %cst_110 = arith.constant dense<0xFF800000> : vector<8xf32>
    %186 = vector.multi_reduction <maximumf>, %185, %cst_110 [1] : vector<8x8xf32> to vector<8xf32>
    %187 = vector.shape_cast %186 : vector<8xf32> to vector<8x1xf32>
    %188 = vector.broadcast %187 : vector<8x1xf32> to vector<8x8xf32>
    %189 = arith.subf %185, %188 : vector<8x8xf32>
    %190 = math.exp %189 : vector<8x8xf32>
    %cst_111 = arith.constant dense<0.000000e+00> : vector<8xf32>
    %191 = vector.multi_reduction <add>, %190, %cst_111 [1] : vector<8x8xf32> to vector<8xf32>
    %192 = vector.shape_cast %191 : vector<8xf32> to vector<8x1xf32>
    %193 = tpu.reciprocal %192 {approx = true} : vector<8x1xf32> -> vector<8x1xf32>
    %194 = vector.broadcast %193 : vector<8x1xf32> to vector<8x8xf32>
    %195 = arith.mulf %190, %194 : vector<8x8xf32>
    %196 = arith.truncf %195 : vector<8x8xf32> to vector<8x8xbf16>
    %197 = arith.truncf %181 : vector<8x8xf32> to vector<8x8xbf16>
    %cst_112 = arith.constant dense<0.000000e+00> : vector<8x8xf32>
    %198 = tpu.matmul %196, %197, %cst_112 {dimension_numbers = #tpu.dot_dimension_numbers<[1], [0], [0], [1], [0, 0, 1, 1], [], []>} : vector<8x8xbf16>, vector<8x8xbf16>, vector<8x8xf32> -> vector<8x8xf32>
    %199 = arith.truncf %198 : vector<8x8xf32> to vector<8x8xbf16>
    %c24_113 = arith.constant 24 : index
    %c0_114 = arith.constant 0 : index
    %200 = vector.load %arg20[%c24_113, %c0_114] : memref<32x32xbf16, #tpu.memory_space<vmem>>, vector<8x32xbf16>
    %cst_115 = arith.constant dense<0.000000e+00> : vector<8x32xf32>
    %201 = tpu.matmul %199, %200, %cst_115 {dimension_numbers = #tpu.dot_dimension_numbers<[1], [0], [0], [1], [0, 0, 1, 1], [], []>} : vector<8x8xbf16>, vector<8x32xbf16>, vector<8x32xf32> -> vector<8x32xf32>
    %202 = arith.addf %166, %201 : vector<8x32xf32>
    %c0_116 = arith.constant 0 : index
    %c0_117 = arith.constant 0 : index
    %203 = vector.load %arg21[%c0_116, %c0_117] : memref<1x32xf32, #tpu.memory_space<vmem>>, vector<1x32xf32>
    %204 = vector.broadcast %203 : vector<1x32xf32> to vector<8x32xf32>
    %205 = arith.addf %202, %204 : vector<8x32xf32>
    %206 = arith.addf %1, %205 : vector<8x32xf32>
    %c0_118 = arith.constant 0 : index
    %c0_119 = arith.constant 0 : index
    %207 = vector.load %arg10[%c0_118, %c0_119] : memref<1x32xf32, #tpu.memory_space<vmem>>, vector<1x32xf32>
    %c0_120 = arith.constant 0 : index
    %c0_121 = arith.constant 0 : index
    %208 = vector.load %arg11[%c0_120, %c0_121] : memref<1x32xf32, #tpu.memory_space<vmem>>, vector<1x32xf32>
    %cst_122 = arith.constant dense<0.000000e+00> : vector<8xf32>
    %209 = vector.multi_reduction <add>, %206, %cst_122 [1] : vector<8x32xf32> to vector<8xf32>
    %210 = vector.shape_cast %209 : vector<8xf32> to vector<8x1xf32>
    %cst_123 = arith.constant 3.200000e+01 : f32
    %211 = vector.broadcast %cst_123 : f32 to vector<8x1xf32>
    %212 = arith.divf %210, %211 : vector<8x1xf32>
    %213 = vector.broadcast %212 : vector<8x1xf32> to vector<8x32xf32>
    %214 = arith.subf %206, %213 : vector<8x32xf32>
    %215 = arith.mulf %214, %214 : vector<8x32xf32>
    %cst_124 = arith.constant dense<0.000000e+00> : vector<8xf32>
    %216 = vector.multi_reduction <add>, %215, %cst_124 [1] : vector<8x32xf32> to vector<8xf32>
    %217 = vector.shape_cast %216 : vector<8xf32> to vector<8x1xf32>
    %cst_125 = arith.constant 3.200000e+01 : f32
    %218 = vector.broadcast %cst_125 : f32 to vector<8x1xf32>
    %219 = arith.divf %217, %218 : vector<8x1xf32>
    %220 = vector.broadcast %212 : vector<8x1xf32> to vector<8x32xf32>
    %221 = arith.subf %206, %220 : vector<8x32xf32>
    %cst_126 = arith.constant 9.99999974E-6 : f32
    %222 = vector.broadcast %cst_126 : f32 to vector<8x1xf32>
    %223 = arith.addf %219, %222 : vector<8x1xf32>
    %224 = math.rsqrt %223 : vector<8x1xf32>
    %225 = vector.broadcast %224 : vector<8x1xf32> to vector<8x32xf32>
    %226 = arith.mulf %221, %225 : vector<8x32xf32>
    %227 = vector.broadcast %207 : vector<1x32xf32> to vector<8x32xf32>
    %228 = arith.mulf %226, %227 : vector<8x32xf32>
    %229 = vector.broadcast %208 : vector<1x32xf32> to vector<8x32xf32>
    %230 = arith.addf %228, %229 : vector<8x32xf32>
    %231 = arith.truncf %230 : vector<8x32xf32> to vector<8x32xbf16>
    %232 = arith.truncf %5 : vector<16x32xf32> to vector<16x32xbf16>
    %c0_127 = arith.constant 0 : index
    %c0_128 = arith.constant 0 : index
    %233 = vector.load %arg22[%c0_127, %c0_128] : memref<32x32xbf16, #tpu.memory_space<vmem>>, vector<32x8xbf16>
    %cst_129 = arith.constant dense<0.000000e+00> : vector<8x8xf32>
    %234 = tpu.matmul %231, %233, %cst_129 {dimension_numbers = #tpu.dot_dimension_numbers<[1], [0], [0], [1], [0, 0, 1, 1], [], []>} : vector<8x32xbf16>, vector<32x8xbf16>, vector<8x8xf32> -> vector<8x8xf32>
    %c0_130 = arith.constant 0 : index
    %c0_131 = arith.constant 0 : index
    %235 = vector.load %arg23[%c0_130, %c0_131] : memref<1x32xf32, #tpu.memory_space<vmem>>, vector<1x8xf32>
    %236 = vector.broadcast %235 : vector<1x8xf32> to vector<8x8xf32>
    %237 = arith.addf %234, %236 : vector<8x8xf32>
    %c0_132 = arith.constant 0 : index
    %c0_133 = arith.constant 0 : index
    %238 = vector.load %arg24[%c0_132, %c0_133] : memref<32x32xbf16, #tpu.memory_space<vmem>>, vector<32x8xbf16>
    %cst_134 = arith.constant dense<0.000000e+00> : vector<16x8xf32>
    %239 = tpu.matmul %232, %238, %cst_134 {dimension_numbers = #tpu.dot_dimension_numbers<[1], [0], [0], [1], [0, 0, 1, 1], [], []>} : vector<16x32xbf16>, vector<32x8xbf16>, vector<16x8xf32> -> vector<16x8xf32>
    %c0_135 = arith.constant 0 : index
    %c0_136 = arith.constant 0 : index
    %240 = vector.load %arg25[%c0_135, %c0_136] : memref<1x32xf32, #tpu.memory_space<vmem>>, vector<1x8xf32>
    %241 = vector.broadcast %240 : vector<1x8xf32> to vector<16x8xf32>
    %242 = arith.addf %239, %241 : vector<16x8xf32>
    %c0_137 = arith.constant 0 : index
    %c0_138 = arith.constant 0 : index
    %243 = vector.load %arg26[%c0_137, %c0_138] : memref<32x32xbf16, #tpu.memory_space<vmem>>, vector<32x8xbf16>
    %cst_139 = arith.constant dense<0.000000e+00> : vector<16x8xf32>
    %244 = tpu.matmul %232, %243, %cst_139 {dimension_numbers = #tpu.dot_dimension_numbers<[1], [0], [0], [1], [0, 0, 1, 1], [], []>} : vector<16x32xbf16>, vector<32x8xbf16>, vector<16x8xf32> -> vector<16x8xf32>
    %c0_140 = arith.constant 0 : index
    %c0_141 = arith.constant 0 : index
    %245 = vector.load %arg27[%c0_140, %c0_141] : memref<1x32xf32, #tpu.memory_space<vmem>>, vector<1x8xf32>
    %246 = vector.broadcast %245 : vector<1x8xf32> to vector<16x8xf32>
    %247 = arith.addf %244, %246 : vector<16x8xf32>
    %248 = arith.truncf %237 : vector<8x8xf32> to vector<8x8xbf16>
    %249 = arith.truncf %242 : vector<16x8xf32> to vector<16x8xbf16>
    %cst_142 = arith.constant dense<0.000000e+00> : vector<8x16xf32>
    %250 = tpu.matmul %248, %249, %cst_142 {dimension_numbers = #tpu.dot_dimension_numbers<[1], [1], [0], [0], [0, 0, 1, 0], [], []>} : vector<8x8xbf16>, vector<16x8xbf16>, vector<8x16xf32> -> vector<8x16xf32>
    %cst_143 = arith.constant dense<0xFF800000> : vector<8xf32>
    %251 = vector.multi_reduction <maximumf>, %250, %cst_143 [1] : vector<8x16xf32> to vector<8xf32>
    %252 = vector.shape_cast %251 : vector<8xf32> to vector<8x1xf32>
    %253 = vector.broadcast %252 : vector<8x1xf32> to vector<8x16xf32>
    %254 = arith.subf %250, %253 : vector<8x16xf32>
    %255 = math.exp %254 : vector<8x16xf32>
    %cst_144 = arith.constant dense<0.000000e+00> : vector<8xf32>
    %256 = vector.multi_reduction <add>, %255, %cst_144 [1] : vector<8x16xf32> to vector<8xf32>
    %257 = vector.shape_cast %256 : vector<8xf32> to vector<8x1xf32>
    %258 = tpu.reciprocal %257 {approx = true} : vector<8x1xf32> -> vector<8x1xf32>
    %259 = vector.broadcast %258 : vector<8x1xf32> to vector<8x16xf32>
    %260 = arith.mulf %255, %259 : vector<8x16xf32>
    %261 = arith.truncf %260 : vector<8x16xf32> to vector<8x16xbf16>
    %262 = arith.truncf %247 : vector<16x8xf32> to vector<16x8xbf16>
    %cst_145 = arith.constant dense<0.000000e+00> : vector<8x8xf32>
    %263 = tpu.matmul %261, %262, %cst_145 {dimension_numbers = #tpu.dot_dimension_numbers<[1], [0], [0], [1], [0, 0, 1, 1], [], []>} : vector<8x16xbf16>, vector<16x8xbf16>, vector<8x8xf32> -> vector<8x8xf32>
    %264 = arith.truncf %263 : vector<8x8xf32> to vector<8x8xbf16>
    %c0_146 = arith.constant 0 : index
    %c0_147 = arith.constant 0 : index
    %265 = vector.load %arg28[%c0_146, %c0_147] : memref<32x32xbf16, #tpu.memory_space<vmem>>, vector<8x32xbf16>
    %cst_148 = arith.constant dense<0.000000e+00> : vector<8x32xf32>
    %266 = tpu.matmul %264, %265, %cst_148 {dimension_numbers = #tpu.dot_dimension_numbers<[1], [0], [0], [1], [0, 0, 1, 1], [], []>} : vector<8x8xbf16>, vector<8x32xbf16>, vector<8x32xf32> -> vector<8x32xf32>
    %c0_149 = arith.constant 0 : index
    %c8_150 = arith.constant 8 : index
    %267 = vector.load %arg22[%c0_149, %c8_150] : memref<32x32xbf16, #tpu.memory_space<vmem>>, vector<32x8xbf16>
    %cst_151 = arith.constant dense<0.000000e+00> : vector<8x8xf32>
    %268 = tpu.matmul %231, %267, %cst_151 {dimension_numbers = #tpu.dot_dimension_numbers<[1], [0], [0], [1], [0, 0, 1, 1], [], []>} : vector<8x32xbf16>, vector<32x8xbf16>, vector<8x8xf32> -> vector<8x8xf32>
    %c0_152 = arith.constant 0 : index
    %c8_153 = arith.constant 8 : index
    %269 = vector.load %arg23[%c0_152, %c8_153] : memref<1x32xf32, #tpu.memory_space<vmem>>, vector<1x8xf32>
    %270 = vector.broadcast %269 : vector<1x8xf32> to vector<8x8xf32>
    %271 = arith.addf %268, %270 : vector<8x8xf32>
    %c0_154 = arith.constant 0 : index
    %c8_155 = arith.constant 8 : index
    %272 = vector.load %arg24[%c0_154, %c8_155] : memref<32x32xbf16, #tpu.memory_space<vmem>>, vector<32x8xbf16>
    %cst_156 = arith.constant dense<0.000000e+00> : vector<16x8xf32>
    %273 = tpu.matmul %232, %272, %cst_156 {dimension_numbers = #tpu.dot_dimension_numbers<[1], [0], [0], [1], [0, 0, 1, 1], [], []>} : vector<16x32xbf16>, vector<32x8xbf16>, vector<16x8xf32> -> vector<16x8xf32>
    %c0_157 = arith.constant 0 : index
    %c8_158 = arith.constant 8 : index
    %274 = vector.load %arg25[%c0_157, %c8_158] : memref<1x32xf32, #tpu.memory_space<vmem>>, vector<1x8xf32>
    %275 = vector.broadcast %274 : vector<1x8xf32> to vector<16x8xf32>
    %276 = arith.addf %273, %275 : vector<16x8xf32>
    %c0_159 = arith.constant 0 : index
    %c8_160 = arith.constant 8 : index
    %277 = vector.load %arg26[%c0_159, %c8_160] : memref<32x32xbf16, #tpu.memory_space<vmem>>, vector<32x8xbf16>
    %cst_161 = arith.constant dense<0.000000e+00> : vector<16x8xf32>
    %278 = tpu.matmul %232, %277, %cst_161 {dimension_numbers = #tpu.dot_dimension_numbers<[1], [0], [0], [1], [0, 0, 1, 1], [], []>} : vector<16x32xbf16>, vector<32x8xbf16>, vector<16x8xf32> -> vector<16x8xf32>
    %c0_162 = arith.constant 0 : index
    %c8_163 = arith.constant 8 : index
    %279 = vector.load %arg27[%c0_162, %c8_163] : memref<1x32xf32, #tpu.memory_space<vmem>>, vector<1x8xf32>
    %280 = vector.broadcast %279 : vector<1x8xf32> to vector<16x8xf32>
    %281 = arith.addf %278, %280 : vector<16x8xf32>
    %282 = arith.truncf %271 : vector<8x8xf32> to vector<8x8xbf16>
    %283 = arith.truncf %276 : vector<16x8xf32> to vector<16x8xbf16>
    %cst_164 = arith.constant dense<0.000000e+00> : vector<8x16xf32>
    %284 = tpu.matmul %282, %283, %cst_164 {dimension_numbers = #tpu.dot_dimension_numbers<[1], [1], [0], [0], [0, 0, 1, 0], [], []>} : vector<8x8xbf16>, vector<16x8xbf16>, vector<8x16xf32> -> vector<8x16xf32>
    %cst_165 = arith.constant dense<0xFF800000> : vector<8xf32>
    %285 = vector.multi_reduction <maximumf>, %284, %cst_165 [1] : vector<8x16xf32> to vector<8xf32>
    %286 = vector.shape_cast %285 : vector<8xf32> to vector<8x1xf32>
    %287 = vector.broadcast %286 : vector<8x1xf32> to vector<8x16xf32>
    %288 = arith.subf %284, %287 : vector<8x16xf32>
    %289 = math.exp %288 : vector<8x16xf32>
    %cst_166 = arith.constant dense<0.000000e+00> : vector<8xf32>
    %290 = vector.multi_reduction <add>, %289, %cst_166 [1] : vector<8x16xf32> to vector<8xf32>
    %291 = vector.shape_cast %290 : vector<8xf32> to vector<8x1xf32>
    %292 = tpu.reciprocal %291 {approx = true} : vector<8x1xf32> -> vector<8x1xf32>
    %293 = vector.broadcast %292 : vector<8x1xf32> to vector<8x16xf32>
    %294 = arith.mulf %289, %293 : vector<8x16xf32>
    %295 = arith.truncf %294 : vector<8x16xf32> to vector<8x16xbf16>
    %296 = arith.truncf %281 : vector<16x8xf32> to vector<16x8xbf16>
    %cst_167 = arith.constant dense<0.000000e+00> : vector<8x8xf32>
    %297 = tpu.matmul %295, %296, %cst_167 {dimension_numbers = #tpu.dot_dimension_numbers<[1], [0], [0], [1], [0, 0, 1, 1], [], []>} : vector<8x16xbf16>, vector<16x8xbf16>, vector<8x8xf32> -> vector<8x8xf32>
    %298 = arith.truncf %297 : vector<8x8xf32> to vector<8x8xbf16>
    %c8_168 = arith.constant 8 : index
    %c0_169 = arith.constant 0 : index
    %299 = vector.load %arg28[%c8_168, %c0_169] : memref<32x32xbf16, #tpu.memory_space<vmem>>, vector<8x32xbf16>
    %cst_170 = arith.constant dense<0.000000e+00> : vector<8x32xf32>
    %300 = tpu.matmul %298, %299, %cst_170 {dimension_numbers = #tpu.dot_dimension_numbers<[1], [0], [0], [1], [0, 0, 1, 1], [], []>} : vector<8x8xbf16>, vector<8x32xbf16>, vector<8x32xf32> -> vector<8x32xf32>
    %301 = arith.addf %266, %300 : vector<8x32xf32>
    %c0_171 = arith.constant 0 : index
    %c16_172 = arith.constant 16 : index
    %302 = vector.load %arg22[%c0_171, %c16_172] : memref<32x32xbf16, #tpu.memory_space<vmem>>, vector<32x8xbf16>
    %cst_173 = arith.constant dense<0.000000e+00> : vector<8x8xf32>
    %303 = tpu.matmul %231, %302, %cst_173 {dimension_numbers = #tpu.dot_dimension_numbers<[1], [0], [0], [1], [0, 0, 1, 1], [], []>} : vector<8x32xbf16>, vector<32x8xbf16>, vector<8x8xf32> -> vector<8x8xf32>
    %c0_174 = arith.constant 0 : index
    %c16_175 = arith.constant 16 : index
    %304 = vector.load %arg23[%c0_174, %c16_175] : memref<1x32xf32, #tpu.memory_space<vmem>>, vector<1x8xf32>
    %305 = vector.broadcast %304 : vector<1x8xf32> to vector<8x8xf32>
    %306 = arith.addf %303, %305 : vector<8x8xf32>
    %c0_176 = arith.constant 0 : index
    %c16_177 = arith.constant 16 : index
    %307 = vector.load %arg24[%c0_176, %c16_177] : memref<32x32xbf16, #tpu.memory_space<vmem>>, vector<32x8xbf16>
    %cst_178 = arith.constant dense<0.000000e+00> : vector<16x8xf32>
    %308 = tpu.matmul %232, %307, %cst_178 {dimension_numbers = #tpu.dot_dimension_numbers<[1], [0], [0], [1], [0, 0, 1, 1], [], []>} : vector<16x32xbf16>, vector<32x8xbf16>, vector<16x8xf32> -> vector<16x8xf32>
    %c0_179 = arith.constant 0 : index
    %c16_180 = arith.constant 16 : index
    %309 = vector.load %arg25[%c0_179, %c16_180] : memref<1x32xf32, #tpu.memory_space<vmem>>, vector<1x8xf32>
    %310 = vector.broadcast %309 : vector<1x8xf32> to vector<16x8xf32>
    %311 = arith.addf %308, %310 : vector<16x8xf32>
    %c0_181 = arith.constant 0 : index
    %c16_182 = arith.constant 16 : index
    %312 = vector.load %arg26[%c0_181, %c16_182] : memref<32x32xbf16, #tpu.memory_space<vmem>>, vector<32x8xbf16>
    %cst_183 = arith.constant dense<0.000000e+00> : vector<16x8xf32>
    %313 = tpu.matmul %232, %312, %cst_183 {dimension_numbers = #tpu.dot_dimension_numbers<[1], [0], [0], [1], [0, 0, 1, 1], [], []>} : vector<16x32xbf16>, vector<32x8xbf16>, vector<16x8xf32> -> vector<16x8xf32>
    %c0_184 = arith.constant 0 : index
    %c16_185 = arith.constant 16 : index
    %314 = vector.load %arg27[%c0_184, %c16_185] : memref<1x32xf32, #tpu.memory_space<vmem>>, vector<1x8xf32>
    %315 = vector.broadcast %314 : vector<1x8xf32> to vector<16x8xf32>
    %316 = arith.addf %313, %315 : vector<16x8xf32>
    %317 = arith.truncf %306 : vector<8x8xf32> to vector<8x8xbf16>
    %318 = arith.truncf %311 : vector<16x8xf32> to vector<16x8xbf16>
    %cst_186 = arith.constant dense<0.000000e+00> : vector<8x16xf32>
    %319 = tpu.matmul %317, %318, %cst_186 {dimension_numbers = #tpu.dot_dimension_numbers<[1], [1], [0], [0], [0, 0, 1, 0], [], []>} : vector<8x8xbf16>, vector<16x8xbf16>, vector<8x16xf32> -> vector<8x16xf32>
    %cst_187 = arith.constant dense<0xFF800000> : vector<8xf32>
    %320 = vector.multi_reduction <maximumf>, %319, %cst_187 [1] : vector<8x16xf32> to vector<8xf32>
    %321 = vector.shape_cast %320 : vector<8xf32> to vector<8x1xf32>
    %322 = vector.broadcast %321 : vector<8x1xf32> to vector<8x16xf32>
    %323 = arith.subf %319, %322 : vector<8x16xf32>
    %324 = math.exp %323 : vector<8x16xf32>
    %cst_188 = arith.constant dense<0.000000e+00> : vector<8xf32>
    %325 = vector.multi_reduction <add>, %324, %cst_188 [1] : vector<8x16xf32> to vector<8xf32>
    %326 = vector.shape_cast %325 : vector<8xf32> to vector<8x1xf32>
    %327 = tpu.reciprocal %326 {approx = true} : vector<8x1xf32> -> vector<8x1xf32>
    %328 = vector.broadcast %327 : vector<8x1xf32> to vector<8x16xf32>
    %329 = arith.mulf %324, %328 : vector<8x16xf32>
    %330 = arith.truncf %329 : vector<8x16xf32> to vector<8x16xbf16>
    %331 = arith.truncf %316 : vector<16x8xf32> to vector<16x8xbf16>
    %cst_189 = arith.constant dense<0.000000e+00> : vector<8x8xf32>
    %332 = tpu.matmul %330, %331, %cst_189 {dimension_numbers = #tpu.dot_dimension_numbers<[1], [0], [0], [1], [0, 0, 1, 1], [], []>} : vector<8x16xbf16>, vector<16x8xbf16>, vector<8x8xf32> -> vector<8x8xf32>
    %333 = arith.truncf %332 : vector<8x8xf32> to vector<8x8xbf16>
    %c16_190 = arith.constant 16 : index
    %c0_191 = arith.constant 0 : index
    %334 = vector.load %arg28[%c16_190, %c0_191] : memref<32x32xbf16, #tpu.memory_space<vmem>>, vector<8x32xbf16>
    %cst_192 = arith.constant dense<0.000000e+00> : vector<8x32xf32>
    %335 = tpu.matmul %333, %334, %cst_192 {dimension_numbers = #tpu.dot_dimension_numbers<[1], [0], [0], [1], [0, 0, 1, 1], [], []>} : vector<8x8xbf16>, vector<8x32xbf16>, vector<8x32xf32> -> vector<8x32xf32>
    %336 = arith.addf %301, %335 : vector<8x32xf32>
    %c0_193 = arith.constant 0 : index
    %c24_194 = arith.constant 24 : index
    %337 = vector.load %arg22[%c0_193, %c24_194] : memref<32x32xbf16, #tpu.memory_space<vmem>>, vector<32x8xbf16>
    %cst_195 = arith.constant dense<0.000000e+00> : vector<8x8xf32>
    %338 = tpu.matmul %231, %337, %cst_195 {dimension_numbers = #tpu.dot_dimension_numbers<[1], [0], [0], [1], [0, 0, 1, 1], [], []>} : vector<8x32xbf16>, vector<32x8xbf16>, vector<8x8xf32> -> vector<8x8xf32>
    %c0_196 = arith.constant 0 : index
    %c24_197 = arith.constant 24 : index
    %339 = vector.load %arg23[%c0_196, %c24_197] : memref<1x32xf32, #tpu.memory_space<vmem>>, vector<1x8xf32>
    %340 = vector.broadcast %339 : vector<1x8xf32> to vector<8x8xf32>
    %341 = arith.addf %338, %340 : vector<8x8xf32>
    %c0_198 = arith.constant 0 : index
    %c24_199 = arith.constant 24 : index
    %342 = vector.load %arg24[%c0_198, %c24_199] : memref<32x32xbf16, #tpu.memory_space<vmem>>, vector<32x8xbf16>
    %cst_200 = arith.constant dense<0.000000e+00> : vector<16x8xf32>
    %343 = tpu.matmul %232, %342, %cst_200 {dimension_numbers = #tpu.dot_dimension_numbers<[1], [0], [0], [1], [0, 0, 1, 1], [], []>} : vector<16x32xbf16>, vector<32x8xbf16>, vector<16x8xf32> -> vector<16x8xf32>
    %c0_201 = arith.constant 0 : index
    %c24_202 = arith.constant 24 : index
    %344 = vector.load %arg25[%c0_201, %c24_202] : memref<1x32xf32, #tpu.memory_space<vmem>>, vector<1x8xf32>
    %345 = vector.broadcast %344 : vector<1x8xf32> to vector<16x8xf32>
    %346 = arith.addf %343, %345 : vector<16x8xf32>
    %c0_203 = arith.constant 0 : index
    %c24_204 = arith.constant 24 : index
    %347 = vector.load %arg26[%c0_203, %c24_204] : memref<32x32xbf16, #tpu.memory_space<vmem>>, vector<32x8xbf16>
    %cst_205 = arith.constant dense<0.000000e+00> : vector<16x8xf32>
    %348 = tpu.matmul %232, %347, %cst_205 {dimension_numbers = #tpu.dot_dimension_numbers<[1], [0], [0], [1], [0, 0, 1, 1], [], []>} : vector<16x32xbf16>, vector<32x8xbf16>, vector<16x8xf32> -> vector<16x8xf32>
    %c0_206 = arith.constant 0 : index
    %c24_207 = arith.constant 24 : index
    %349 = vector.load %arg27[%c0_206, %c24_207] : memref<1x32xf32, #tpu.memory_space<vmem>>, vector<1x8xf32>
    %350 = vector.broadcast %349 : vector<1x8xf32> to vector<16x8xf32>
    %351 = arith.addf %348, %350 : vector<16x8xf32>
    %352 = arith.truncf %341 : vector<8x8xf32> to vector<8x8xbf16>
    %353 = arith.truncf %346 : vector<16x8xf32> to vector<16x8xbf16>
    %cst_208 = arith.constant dense<0.000000e+00> : vector<8x16xf32>
    %354 = tpu.matmul %352, %353, %cst_208 {dimension_numbers = #tpu.dot_dimension_numbers<[1], [1], [0], [0], [0, 0, 1, 0], [], []>} : vector<8x8xbf16>, vector<16x8xbf16>, vector<8x16xf32> -> vector<8x16xf32>
    %cst_209 = arith.constant dense<0xFF800000> : vector<8xf32>
    %355 = vector.multi_reduction <maximumf>, %354, %cst_209 [1] : vector<8x16xf32> to vector<8xf32>
    %356 = vector.shape_cast %355 : vector<8xf32> to vector<8x1xf32>
    %357 = vector.broadcast %356 : vector<8x1xf32> to vector<8x16xf32>
    %358 = arith.subf %354, %357 : vector<8x16xf32>
    %359 = math.exp %358 : vector<8x16xf32>
    %cst_210 = arith.constant dense<0.000000e+00> : vector<8xf32>
    %360 = vector.multi_reduction <add>, %359, %cst_210 [1] : vector<8x16xf32> to vector<8xf32>
    %361 = vector.shape_cast %360 : vector<8xf32> to vector<8x1xf32>
    %362 = tpu.reciprocal %361 {approx = true} : vector<8x1xf32> -> vector<8x1xf32>
    %363 = vector.broadcast %362 : vector<8x1xf32> to vector<8x16xf32>
    %364 = arith.mulf %359, %363 : vector<8x16xf32>
    %365 = arith.truncf %364 : vector<8x16xf32> to vector<8x16xbf16>
    %366 = arith.truncf %351 : vector<16x8xf32> to vector<16x8xbf16>
    %cst_211 = arith.constant dense<0.000000e+00> : vector<8x8xf32>
    %367 = tpu.matmul %365, %366, %cst_211 {dimension_numbers = #tpu.dot_dimension_numbers<[1], [0], [0], [1], [0, 0, 1, 1], [], []>} : vector<8x16xbf16>, vector<16x8xbf16>, vector<8x8xf32> -> vector<8x8xf32>
    %368 = arith.truncf %367 : vector<8x8xf32> to vector<8x8xbf16>
    %c24_212 = arith.constant 24 : index
    %c0_213 = arith.constant 0 : index
    %369 = vector.load %arg28[%c24_212, %c0_213] : memref<32x32xbf16, #tpu.memory_space<vmem>>, vector<8x32xbf16>
    %cst_214 = arith.constant dense<0.000000e+00> : vector<8x32xf32>
    %370 = tpu.matmul %368, %369, %cst_214 {dimension_numbers = #tpu.dot_dimension_numbers<[1], [0], [0], [1], [0, 0, 1, 1], [], []>} : vector<8x8xbf16>, vector<8x32xbf16>, vector<8x32xf32> -> vector<8x32xf32>
    %371 = arith.addf %336, %370 : vector<8x32xf32>
    %c0_215 = arith.constant 0 : index
    %c0_216 = arith.constant 0 : index
    %372 = vector.load %arg29[%c0_215, %c0_216] : memref<1x32xf32, #tpu.memory_space<vmem>>, vector<1x32xf32>
    %373 = vector.broadcast %372 : vector<1x32xf32> to vector<8x32xf32>
    %374 = arith.addf %371, %373 : vector<8x32xf32>
    %375 = arith.addf %206, %374 : vector<8x32xf32>
    %c0_217 = arith.constant 0 : index
    %c0_218 = arith.constant 0 : index
    %376 = vector.load %arg12[%c0_217, %c0_218] : memref<1x32xf32, #tpu.memory_space<vmem>>, vector<1x32xf32>
    %c0_219 = arith.constant 0 : index
    %c0_220 = arith.constant 0 : index
    %377 = vector.load %arg13[%c0_219, %c0_220] : memref<1x32xf32, #tpu.memory_space<vmem>>, vector<1x32xf32>
    %cst_221 = arith.constant dense<0.000000e+00> : vector<8xf32>
    %378 = vector.multi_reduction <add>, %375, %cst_221 [1] : vector<8x32xf32> to vector<8xf32>
    %379 = vector.shape_cast %378 : vector<8xf32> to vector<8x1xf32>
    %cst_222 = arith.constant 3.200000e+01 : f32
    %380 = vector.broadcast %cst_222 : f32 to vector<8x1xf32>
    %381 = arith.divf %379, %380 : vector<8x1xf32>
    %382 = vector.broadcast %381 : vector<8x1xf32> to vector<8x32xf32>
    %383 = arith.subf %375, %382 : vector<8x32xf32>
    %384 = arith.mulf %383, %383 : vector<8x32xf32>
    %cst_223 = arith.constant dense<0.000000e+00> : vector<8xf32>
    %385 = vector.multi_reduction <add>, %384, %cst_223 [1] : vector<8x32xf32> to vector<8xf32>
    %386 = vector.shape_cast %385 : vector<8xf32> to vector<8x1xf32>
    %cst_224 = arith.constant 3.200000e+01 : f32
    %387 = vector.broadcast %cst_224 : f32 to vector<8x1xf32>
    %388 = arith.divf %386, %387 : vector<8x1xf32>
    %389 = vector.broadcast %381 : vector<8x1xf32> to vector<8x32xf32>
    %390 = arith.subf %375, %389 : vector<8x32xf32>
    %cst_225 = arith.constant 9.99999974E-6 : f32
    %391 = vector.broadcast %cst_225 : f32 to vector<8x1xf32>
    %392 = arith.addf %388, %391 : vector<8x1xf32>
    %393 = math.rsqrt %392 : vector<8x1xf32>
    %394 = vector.broadcast %393 : vector<8x1xf32> to vector<8x32xf32>
    %395 = arith.mulf %390, %394 : vector<8x32xf32>
    %396 = vector.broadcast %376 : vector<1x32xf32> to vector<8x32xf32>
    %397 = arith.mulf %395, %396 : vector<8x32xf32>
    %398 = vector.broadcast %377 : vector<1x32xf32> to vector<8x32xf32>
    %399 = arith.addf %397, %398 : vector<8x32xf32>
    %400 = arith.truncf %399 : vector<8x32xf32> to vector<8x32xbf16>
    %c0_226 = arith.constant 0 : index
    %c0_227 = arith.constant 0 : index
    %401 = vector.load %arg30[%c0_226, %c0_227] : memref<32x64xbf16, #tpu.memory_space<vmem>>, vector<32x64xbf16>
    %cst_228 = arith.constant dense<0.000000e+00> : vector<8x64xf32>
    %402 = tpu.matmul %400, %401, %cst_228 {dimension_numbers = #tpu.dot_dimension_numbers<[1], [0], [0], [1], [0, 0, 1, 1], [], []>} : vector<8x32xbf16>, vector<32x64xbf16>, vector<8x64xf32> -> vector<8x64xf32>
    %c0_229 = arith.constant 0 : index
    %c0_230 = arith.constant 0 : index
    %403 = vector.load %arg31[%c0_229, %c0_230] : memref<1x64xf32, #tpu.memory_space<vmem>>, vector<1x64xf32>
    %404 = vector.broadcast %403 : vector<1x64xf32> to vector<8x64xf32>
    %405 = arith.addf %402, %404 : vector<8x64xf32>
    %cst_231 = arith.constant 5.000000e-01 : f32
    %406 = vector.broadcast %cst_231 : f32 to vector<8x64xf32>
    %407 = arith.mulf %406, %405 : vector<8x64xf32>
    %cst_232 = arith.constant 0.707106769 : f32
    %408 = vector.broadcast %cst_232 : f32 to vector<8x64xf32>
    %409 = arith.mulf %405, %408 : vector<8x64xf32>
    %410 = math.erf %409 : vector<8x64xf32>
    %cst_233 = arith.constant 1.000000e+00 : f32
    %411 = vector.broadcast %cst_233 : f32 to vector<8x64xf32>
    %412 = arith.addf %411, %410 : vector<8x64xf32>
    %413 = arith.mulf %407, %412 : vector<8x64xf32>
    %414 = arith.truncf %413 : vector<8x64xf32> to vector<8x64xbf16>
    %c0_234 = arith.constant 0 : index
    %c0_235 = arith.constant 0 : index
    %415 = vector.load %arg32[%c0_234, %c0_235] : memref<64x32xbf16, #tpu.memory_space<vmem>>, vector<64x32xbf16>
    %cst_236 = arith.constant dense<0.000000e+00> : vector<8x32xf32>
    %416 = tpu.matmul %414, %415, %cst_236 {dimension_numbers = #tpu.dot_dimension_numbers<[1], [0], [0], [1], [0, 0, 1, 1], [], []>} : vector<8x64xbf16>, vector<64x32xbf16>, vector<8x32xf32> -> vector<8x32xf32>
    %c0_237 = arith.constant 0 : index
    %c0_238 = arith.constant 0 : index
    %417 = vector.load %arg33[%c0_237, %c0_238] : memref<1x32xf32, #tpu.memory_space<vmem>>, vector<1x32xf32>
    %418 = vector.broadcast %417 : vector<1x32xf32> to vector<8x32xf32>
    %419 = arith.addf %416, %418 : vector<8x32xf32>
    %420 = arith.addf %375, %419 : vector<8x32xf32>
    %c0_239 = arith.constant 0 : index
    %c0_240 = arith.constant 0 : index
    %c0_241 = arith.constant 0 : index
    %c0_242 = arith.constant 0 : index
    %421 = vector.load %arg34[%c0_239, %c0_240, %c0_241, %c0_242] : memref<1x1x8x32xf32, #tpu.memory_space<vmem>>, vector<1x1x8x32xf32>
    %422 = vector.shape_cast %421 : vector<1x1x8x32xf32> to vector<8x32xf32>
    %423 = vector.shape_cast %420 : vector<8x32xf32> to vector<1x1x8x32xf32>
    tpu.vector_store %arg34[%c0_239, %c0_240, %c0_241, %c0_242], %423 {strides = array<i32>} : memref<1x1x8x32xf32, #tpu.memory_space<vmem>>, vector<1x1x8x32xf32>,
    return
  }
  func.func @transform_0(%arg0: i32, %arg1: i32) -> (i32, i32, i32, i32) {
    %c0_i32 = arith.constant 0 : i32
    %c0_i32_0 = arith.constant 0 : i32
    %c0_i32_1 = arith.constant 0 : i32
    return %arg0, %arg1, %c0_i32, %c0_i32_0 : i32, i32, i32, i32
  }
  func.func @transform_1(%arg0: i32, %arg1: i32) -> (i32, i32, i32) {
    %c0_i32 = arith.constant 0 : i32
    %c0_i32_0 = arith.constant 0 : i32
    %c0_i32_1 = arith.constant 0 : i32
    return %arg1, %c0_i32, %c0_i32_0 : i32, i32, i32
  }
  func.func @transform_2(%arg0: i32, %arg1: i32) -> (i32, i32, i32) {
    %c0_i32 = arith.constant 0 : i32
    %c0_i32_0 = arith.constant 0 : i32
    %c0_i32_1 = arith.constant 0 : i32
    return %arg1, %c0_i32, %c0_i32_0 : i32, i32, i32
  }
  func.func @transform_3(%arg0: i32, %arg1: i32) -> (i32, i32, i32) {
    %c0_i32 = arith.constant 0 : i32
    %c0_i32_0 = arith.constant 0 : i32
    %c0_i32_1 = arith.constant 0 : i32
    return %arg0, %c0_i32, %c0_i32_0 : i32, i32, i32
  }
  func.func @transform_4(%arg0: i32, %arg1: i32) -> (i32, i32, i32) {
    %c0_i32 = arith.constant 0 : i32
    %c0_i32_0 = arith.constant 0 : i32
    %c0_i32_1 = arith.constant 0 : i32
    return %arg0, %c0_i32, %c0_i32_0 : i32, i32, i32
  }
  func.func @transform_5(%arg0: i32, %arg1: i32) -> (i32, i32, i32) {
    %c0_i32 = arith.constant 0 : i32
    %c0_i32_0 = arith.constant 0 : i32
    %c0_i32_1 = arith.constant 0 : i32
    return %arg0, %c0_i32, %c0_i32_0 : i32, i32, i32
  }
  func.func @transform_6(%arg0: i32, %arg1: i32) -> (i32, i32) {
    %c0_i32 = arith.constant 0 : i32
    %c0_i32_0 = arith.constant 0 : i32
    %c0_i32_1 = arith.constant 0 : i32
    return %c0_i32, %c0_i32_0 : i32, i32
  }
  func.func @transform_7(%arg0: i32, %arg1: i32) -> (i32, i32) {
    %c0_i32 = arith.constant 0 : i32
    %c0_i32_0 = arith.constant 0 : i32
    %c0_i32_1 = arith.constant 0 : i32
    return %c0_i32, %c0_i32_0 : i32, i32
  }
  func.func @transform_8(%arg0: i32, %arg1: i32) -> (i32, i32) {
    %c0_i32 = arith.constant 0 : i32
    %c0_i32_0 = arith.constant 0 : i32
    %c0_i32_1 = arith.constant 0 : i32
    return %c0_i32, %c0_i32_0 : i32, i32
  }
  func.func @transform_9(%arg0: i32, %arg1: i32) -> (i32, i32) {
    %c0_i32 = arith.constant 0 : i32
    %c0_i32_0 = arith.constant 0 : i32
    %c0_i32_1 = arith.constant 0 : i32
    return %c0_i32, %c0_i32_0 : i32, i32
  }
  func.func @transform_10(%arg0: i32, %arg1: i32) -> (i32, i32) {
    %c0_i32 = arith.constant 0 : i32
    %c0_i32_0 = arith.constant 0 : i32
    %c0_i32_1 = arith.constant 0 : i32
    return %c0_i32, %c0_i32_0 : i32, i32
  }
  func.func @transform_11(%arg0: i32, %arg1: i32) -> (i32, i32) {
    %c0_i32 = arith.constant 0 : i32
    %c0_i32_0 = arith.constant 0 : i32
    %c0_i32_1 = arith.constant 0 : i32
    return %c0_i32, %c0_i32_0 : i32, i32
  }
  func.func @transform_12(%arg0: i32, %arg1: i32) -> (i32, i32) {
    %c0_i32 = arith.constant 0 : i32
    %c0_i32_0 = arith.constant 0 : i32
    %c0_i32_1 = arith.constant 0 : i32
    return %c0_i32, %c0_i32_0 : i32, i32
  }
  func.func @transform_13(%arg0: i32, %arg1: i32) -> (i32, i32) {
    %c0_i32 = arith.constant 0 : i32
    %c0_i32_0 = arith.constant 0 : i32
    %c0_i32_1 = arith.constant 0 : i32
    return %c0_i32, %c0_i32_0 : i32, i32
  }
  func.func @transform_14(%arg0: i32, %arg1: i32) -> (i32, i32) {
    %c0_i32 = arith.constant 0 : i32
    %c0_i32_0 = arith.constant 0 : i32
    %c0_i32_1 = arith.constant 0 : i32
    return %c0_i32, %c0_i32_0 : i32, i32
  }
  func.func @transform_15(%arg0: i32, %arg1: i32) -> (i32, i32) {
    %c0_i32 = arith.constant 0 : i32
    %c0_i32_0 = arith.constant 0 : i32
    %c0_i32_1 = arith.constant 0 : i32
    return %c0_i32, %c0_i32_0 : i32, i32
  }
  func.func @transform_16(%arg0: i32, %arg1: i32) -> (i32, i32) {
    %c0_i32 = arith.constant 0 : i32
    %c0_i32_0 = arith.constant 0 : i32
    %c0_i32_1 = arith.constant 0 : i32
    return %c0_i32, %c0_i32_0 : i32, i32
  }
  func.func @transform_17(%arg0: i32, %arg1: i32) -> (i32, i32) {
    %c0_i32 = arith.constant 0 : i32
    %c0_i32_0 = arith.constant 0 : i32
    %c0_i32_1 = arith.constant 0 : i32
    return %c0_i32, %c0_i32_0 : i32, i32
  }
  func.func @transform_18(%arg0: i32, %arg1: i32) -> (i32, i32) {
    %c0_i32 = arith.constant 0 : i32
    %c0_i32_0 = arith.constant 0 : i32
    %c0_i32_1 = arith.constant 0 : i32
    return %c0_i32, %c0_i32_0 : i32, i32
  }
  func.func @transform_19(%arg0: i32, %arg1: i32) -> (i32, i32) {
    %c0_i32 = arith.constant 0 : i32
    %c0_i32_0 = arith.constant 0 : i32
    %c0_i32_1 = arith.constant 0 : i32
    return %c0_i32, %c0_i32_0 : i32, i32
  }
  func.func @transform_20(%arg0: i32, %arg1: i32) -> (i32, i32) {
    %c0_i32 = arith.constant 0 : i32
    %c0_i32_0 = arith.constant 0 : i32
    %c0_i32_1 = arith.constant 0 : i32
    return %c0_i32, %c0_i32_0 : i32, i32
  }
  func.func @transform_21(%arg0: i32, %arg1: i32) -> (i32, i32) {
    %c0_i32 = arith.constant 0 : i32
    %c0_i32_0 = arith.constant 0 : i32
    %c0_i32_1 = arith.constant 0 : i32
    return %c0_i32, %c0_i32_0 : i32, i32
  }
  func.func @transform_22(%arg0: i32, %arg1: i32) -> (i32, i32) {
    %c0_i32 = arith.constant 0 : i32
    %c0_i32_0 = arith.constant 0 : i32
    %c0_i32_1 = arith.constant 0 : i32
    return %c0_i32, %c0_i32_0 : i32, i32
  }
  func.func @transform_23(%arg0: i32, %arg1: i32) -> (i32, i32) {
    %c0_i32 = arith.constant 0 : i32
    %c0_i32_0 = arith.constant 0 : i32
    %c0_i32_1 = arith.constant 0 : i32
    return %c0_i32, %c0_i32_0 : i32, i32
  }
  func.func @transform_24(%arg0: i32, %arg1: i32) -> (i32, i32) {
    %c0_i32 = arith.constant 0 : i32
    %c0_i32_0 = arith.constant 0 : i32
    %c0_i32_1 = arith.constant 0 : i32
    return %c0_i32, %c0_i32_0 : i32, i32
  }
  func.func @transform_25(%arg0: i32, %arg1: i32) -> (i32, i32) {
    %c0_i32 = arith.constant 0 : i32
    %c0_i32_0 = arith.constant 0 : i32
    %c0_i32_1 = arith.constant 0 : i32
    return %c0_i32, %c0_i32_0 : i32, i32
  }
  func.func @transform_26(%arg0: i32, %arg1: i32) -> (i32, i32) {
    %c0_i32 = arith.constant 0 : i32
    %c0_i32_0 = arith.constant 0 : i32
    %c0_i32_1 = arith.constant 0 : i32
    return %c0_i32, %c0_i32_0 : i32, i32
  }
  func.func @transform_27(%arg0: i32, %arg1: i32) -> (i32, i32) {
    %c0_i32 = arith.constant 0 : i32
    %c0_i32_0 = arith.constant 0 : i32
    %c0_i32_1 = arith.constant 0 : i32
    return %c0_i32, %c0_i32_0 : i32, i32
  }
  func.func @transform_28(%arg0: i32, %arg1: i32) -> (i32, i32) {
    %c0_i32 = arith.constant 0 : i32
    %c0_i32_0 = arith.constant 0 : i32
    %c0_i32_1 = arith.constant 0 : i32
    return %c0_i32, %c0_i32_0 : i32, i32
  }
  func.func @transform_29(%arg0: i32, %arg1: i32) -> (i32, i32) {
    %c0_i32 = arith.constant 0 : i32
    %c0_i32_0 = arith.constant 0 : i32
    %c0_i32_1 = arith.constant 0 : i32
    return %c0_i32, %c0_i32_0 : i32, i32
  }
  func.func @transform_30(%arg0: i32, %arg1: i32) -> (i32, i32) {
    %c0_i32 = arith.constant 0 : i32
    %c0_i32_0 = arith.constant 0 : i32
    %c0_i32_1 = arith.constant 0 : i32
    return %c0_i32, %c0_i32_0 : i32, i32
  }
  func.func @transform_31(%arg0: i32, %arg1: i32) -> (i32, i32) {
    %c0_i32 = arith.constant 0 : i32
    %c0_i32_0 = arith.constant 0 : i32
    %c0_i32_1 = arith.constant 0 : i32
    return %c0_i32, %c0_i32_0 : i32, i32
  }
  func.func @transform_32(%arg0: i32, %arg1: i32) -> (i32, i32, i32, i32) {
    %c0_i32 = arith.constant 0 : i32
    %c0_i32_0 = arith.constant 0 : i32
    %c0_i32_1 = arith.constant 0 : i32
    return %arg0, %arg1, %c0_i32, %c0_i32_0 : i32, i32, i32, i32
  }
}

</mosaic_0001>

<bundles_post_ra>
// kernel: decoder_layer_forward.1
= control target key start
LH: loop header
LB: loop body
LE: loop exit
PB: predicated region body
PF: predicated region fallthrough
CT: control target
= control target key end

     0   :  { %s3103_s6 = smov 1   ;;  %s3104_s10 = smov 2   ;;  %s3763_s0 = inlined_call_operand.smem [shape: u32[33], index: -1, kind: input, shape index: {}] }
   0x1   :  { %s3147_s5 = sld [smem:[%s3763_s0]]   ;;  %s3105_s14 = smov 3  }
   0x2   :  { %s3152_s9 = sld [smem:[%s3763_s0 + %s3103_s6]]   ;;  %s3106_s18 = smov 4  }
   0x3   :  { %s3157_s13 = sld [smem:[%s3763_s0 + %s3104_s10]]   ;;  %s3107_s22 = smov 5  }
   0x4   :  { %s3162_s17 = sld [smem:[%s3763_s0 + %s3105_s14]]   ;;  %s3108_s26 = smov 6  }
   0x5   :  { %s3167_s21 = sld [smem:[%s3763_s0 + %s3106_s18]]   ;;  %s3109_s30 = smov 7  }
   0x6   :  { %s3172_s25 = sld [smem:[%s3763_s0 + %s3107_s22]]   ;;  %s3110_s4 = smov 8  }
   0x7   :  { %s3177_s29 = sld [smem:[%s3763_s0 + %s3108_s26]]   ;;  %s3111_s10 = smov 9  }
   0x8   :  { %s3182_s3 = sld [smem:[%s3763_s0 + %s3109_s30]]   ;;  %s3112_s15 = smov 10  }
   0x9   :  { %3774 = sst [smem:[#allocation2_spill]] %s3157_s13  ;;  %s3113_s20 = smov 11  }
   0xa   :  { %s3187_s8 = sld [smem:[%s3763_s0 + %s3110_s4]]   ;;  %s3114_s26 = smov 12  }
   0xb   :  { %s3192_s14 = sld [smem:[%s3763_s0 + %s3111_s10]]   ;;  %s3115_s1 = smov 13  }
   0xc   :  { %s3197_s19 = sld [smem:[%s3763_s0 + %s3112_s15]]   ;;  %s3116_s7 = smov 14  }
   0xd   :  { %s3202_s24 = sld [smem:[%s3763_s0 + %s3113_s20]]   ;;  %s3117_s15 = smov 15  }
   0xe   :  { %3775 = sst [smem:[#allocation3_spill]] %s3182_s3  ;;  %s3118_s22 = smov 16  }
   0xf   :  { %s3207_s30 = sld [smem:[%s3763_s0 + %s3114_s26]]   ;;  %s3119_s28 = smov 17  }
  0x10   :  { %3776 = sst [smem:[#allocation4_spill]] %s3187_s8  ;;  %s3313_s2 = smov 0  }
  0x11   :  { %3777 = sst [smem:[#allocation5_spill]] %s3192_s14  ;;  %s3317_s10 = smov 0  }
  0x12   :  { %3778 = sst [smem:[#allocation6_spill]] %s3197_s19 }
  0x13   :  { %3779 = sst [smem:[#allocation7_spill]] %s3202_s24 }
  0x14   :  { %s3212_s6 = sld [smem:[%s3763_s0 + %s3115_s1]]   ;;  %s3311_s1 = smov 0  }
  0x15   :  { %s3217_s12 = sld [smem:[%s3763_s0 + %s3116_s7]]   ;;  %s3120_s7 = smov 18  }
  0x16   :  { %s3222_s20 = sld [smem:[%s3763_s0 + %s3117_s15]]   ;;  %s3121_s15 = smov 19  }
  0x17   :  { %s3227_s27 = sld [smem:[%s3763_s0 + %s3118_s22]]   ;;  %s3122_s22 = smov 20  }
  0x18   :  { %s3232_s4 = sld [smem:[%s3763_s0 + %s3119_s28]]   ;;  %s3123_s28 = smov 21  }
  0x19   :  { %s3237_s24 = sld [smem:[%s3763_s0 + %s3120_s7]]   ;;  %s3124_s7 = smov 22  }
  0x1a   :  { %s3242_s19 = sld [smem:[%s3763_s0 + %s3121_s15]]   ;;  %s3125_s15 = smov 23  }
  0x1b   :  { %s3247_s14 = sld [smem:[%s3763_s0 + %s3122_s22]]   ;;  %s3126_s22 = smov 24  }
  0x1c   :  { %s3252_s8 = sld [smem:[%s3763_s0 + %s3123_s28]]   ;;  %s3127_s28 = smov 25  }
  0x1d   :  { %s3257_s13 = sld [smem:[%s3763_s0 + %s3124_s7]]   ;;  %s3128_s7 = smov 26  }
  0x1e   :  { %3780 = sst [smem:[#allocation8_spill]] %s3232_s4 }
  0x20   :  { %3781 = sst [smem:[#allocation9_spill]] %s3242_s19 }
  0x21   :  { %3782 = sst [smem:[#allocation10_spill]] %s3247_s14 }
  0x22   :  { %3783 = sst [smem:[#allocation11_spill]] %s3252_s8 }
  0x23   :  { %3784 = sst [smem:[#allocation12_spill]] %s3257_s13 }
  0x24   :  { %s3262_s19 = sld [smem:[%s3763_s0 + %s3125_s15]]   ;;  %s3129_s15 = smov 27  }
  0x25   :  { %s3267_s14 = sld [smem:[%s3763_s0 + %s3126_s22]]   ;;  %s3130_s22 = smov 28  }
  0x26   :  { %s3272_s8 = sld [smem:[%s3763_s0 + %s3127_s28]]   ;;  %s3131_s28 = smov 29  }
  0x27   :  { %s3277_s13 = sld [smem:[%s3763_s0 + %s3128_s7]]   ;;  %s3132_s7 = smov 30  }
  0x2a   :  { %3785 = sst [smem:[#allocation13_spill]] %s3262_s19 }
  0x2b   :  { %3786 = sst [smem:[#allocation14_spill]] %s3267_s14 }
  0x2c   :  { %3787 = sst [smem:[#allocation15_spill]] %s3272_s8 }
  0x2d   :  { %3788 = sst [smem:[#allocation16_spill]] %s3277_s13 }
  0x2e   :  { %s3282_s19 = sld [smem:[%s3763_s0 + %s3129_s15]]   ;;  %s3133_s15 = smov 31  }
  0x2f   :  { %s3287_s14 = sld [smem:[%s3763_s0 + %s3130_s22]]   ;;  %s3134_s22 = smov 32  }
  0x30   :  { %s3292_s8 = sld [smem:[%s3763_s0 + %s3131_s28]]   ;;  %s3309_s28 = smov 0  }
  0x31   :  { %s3297_s13 = sld [smem:[%s3763_s0 + %s3132_s7]]   ;;  %s3315_s7 = smov 0  }
  0x34   :  { %3789 = sst [smem:[#allocation17_spill]] %s3282_s19 }
  0x35   :  { %3790 = sst [smem:[#allocation18_spill]] %s3287_s14 }
  0x36   :  { %s3302_s19 = sld [smem:[%s3763_s0 + %s3133_s15]]  }
  0x37   :  { %s3307_s14 = sld [smem:[%s3763_s0 + %s3134_s22]]  }
  0x38 LB: > { %s84_s0 = sadd.s32 1, %s3093_s2  ;;  %s87_s11 = sadd.s32 1, %s3097_s7  ;;  %s3101_s10 = sphi %s3317_s10, %s75_s10   ;;  %s3097_s7 = sphi %s3315_s7, %s3815_s7   ;;  %s3093_s2 = sphi %s3313_s2, %s3814_s2   ;;  %s3089_s1 = sphi %s3311_s1, %s3813_s1   ;;  %s3085_s28 = sphi %s3309_s28, %s3812_s28  }
  0x39   : > { %p85_p0 = scmp.ge.s32.totalorder %s84_s0, 2  ;;  %p2772_p1 = scmp.ge.s32.totalorder %s3101_s10, 1 }
  0x3a   : > { %p958_p2 = scmp.lt.s32.totalorder %s3101_s10, 5 }
  0x3b   : > { %s3817_s0 = smov (%p85_p0, %s84_s0), 0  ;;  %s3819_s11 = smov (!%p85_p0, %s87_s11), %s3097_s7 }
  0x3c   : > { %p959_p3 = pnand %p2772_p1, %p958_p2  ;;  %p89_p4 = scmp.ge.s32.totalorder %s3819_s11, 2 }
  0x3d   : > { %p1067_p5 = scmp.lt.s32.totalorder (!%p959_p3), %s3085_s28, 1  ;;  %p1065_p6 = scmp.lt.s32.totalorder (!%p959_p3), %s3089_s1, 1 }
  0x3e   : > { %s3821_s11 = smov (%p89_p4, %s3819_s11), 0  ;;  %962 = sbr.rel (%p959_p3) target bundleno = 5732 (0x1664), region = 148 }
  0x3f   : > { %s3791_s3 = sld [smem:[#allocation3_spill]] (!%p959_p3) }
  0x40   : > { %s3792_s4 = sld [smem:[#allocation8_spill]] (!%p959_p3) }
  0x43   : > { %s3823_s28 = smov (!%p1067_p5, %s3085_s28), 1  ;;  %s3825_s1 = smov (!%p1065_p6, %s3089_s1), 1  ;;  %vm1108_vm0 = vcmask 261120   ;;  %v3135_v4 = vmov 32.0   ;;  %v3359_v7 = vld [vmem:[%s3207_s30 + $0x8] sm:$0xff]  ;;  %v3365_v9 = vld [vmem:[%s3207_s30] sm:$0xff] }
  0x44   : > { %s2775_s15 = sshll.u32 %s3823_s28, 3  ;;  %s2773_s18 = sshll.u32 %s3825_s1, 1  ;;  %3019 = vrcp.f32 %v3135_v4  ;;  %1209 = vmatpush.bf16.msra.mxu0 %v3359_v7  ;;  %v3374_v20 = vld [vmem:[%s3217_s12 + $0x8] sm:$0xff]  ;;  %v3381_v23 = vld [vmem:[%s3217_s12] sm:$0xff]  ;;  %vm1287_vm8 = vcmask 64512   ;;  %vm1323_vm9 = vcmask 1043456  }
  0x45   : > { %s1076_s16 = scalar_lea.vmem %s3152_s9, %s2775_s15  ;;  %s3348_s22 = sadd.s32 %s2773_s18, %s3823_s28  ;;  %1245 = vmatpush.bf16.msra.mxu1 %v3374_v20  ;;  %v3394_v25 = vld [vmem:[%s3227_s27 + $0x8] sm:$0xff]  ;;  %v3398_v26 = vld [vmem:[%s3227_s27] sm:$0xff]  ;;  %vm1951_vm13 = vcmask 130048  }
  0x46   : > { %v1102_v0 = vld [vmem:[%s1076_s16] sm:$0xff]  ;;  %s3769_s23 = sshll.u32 %s3348_s22, 3  ;;  %s3136_s15 = smov 120   ;;  %1278 = vmatpush.bf16.msra.mxu2 %v3394_v25 }
  0x47   : > { %v1148_v1 = vsel %vm1108_vm0, %v1102_v0, 0.0  ;;  %s1072_s26 = scalar_lea.vmem %s3147_s5, %s3769_s23  ;;  %1366 = vrot.lane.b32.xlu2 %v3374_v20, %s3136_s15  ;;  %s1088_s16 = scalar_lea.vmem %s3167_s21, %s3825_s1  ;;  %v3404_v39 = vld [vmem:[%s3222_s20] ss:$0 sm:$0xff] }
  0x48   : > { %1149 = vadd.xlane.f32.xlu0 %v1148_v1  ;;  %v3354_v2 = vld [vmem:[%s1072_s26] sm:$0xff]  ;;  %1210 = vmatpush.bf16.msra.mxu0 %v3365_v9  ;;  %s1091_s18 = scalar_lea.vmem %s3172_s25, %s3825_s1  ;;  %s2778_s26 = sshll.u32 %s3825_s1, 3 }
  0x49   : > { %v1109_v3 = vsel %vm1108_vm0, %v3354_v2, 0.0  ;;  %1246 = vmatpush.bf16.msra.mxu1 %v3381_v23  ;;  %v3001_v45 = vld [vmem:[%s3177_s29] ss:$0 sm:$0xff]  ;;  %s3770_s1 = smov 104   ;;  %s3795_s23 = sld [smem:[#allocation12_spill]] }
  0x4a   : > { %v3020_v5 = vpop.eup %3019  ;;  %1279 = vmatpush.bf16.msra.mxu2 %v3398_v26  ;;  %v3410_v46 = vld [vmem:[%s3212_s6] ss:$0 sm:$0xff] }
  0x4b   : > { %v1113_v6 = vmul.f32 32.0, %v3020_v5  ;;  %vm1117_vm1 = vweird.f32 %v3020_v5  ;;  %v3002_v49 = vld [vmem:[%s3791_s3] ss:$0 sm:$0xff] }
  0x4c   : > { %v3003_v57 = vld [vmem:[%s1088_s16] ss:$0 sm:$0xff]  ;;  %s1085_s16 = scalar_lea.vmem %s3162_s17, %s2778_s26  ;;  %s3793_s26 = sld [smem:[#allocation9_spill]] }
  0x4d   : > { %v1114_v8 = vsub.f32 1.0, %v1113_v6  ;;  %v3004_v60 = vld [vmem:[%s1091_s18] ss:$0 sm:$0xff]  ;;  %s3772_s18 = smov 112  }
  0x4f   : > { %v1115_v10 = vmul.f32 %v3020_v5, %v1114_v8  ;;  %1364 = vrot.lane.b32.xlu2 %v3381_v23, %s3136_s15 }
  0x50   : > { %1110 = vadd.xlane.f32.xlu0 %v1109_v3 }
  0x51   : > { %v1116_v11 = vadd.f32 %v3020_v5, %v1115_v10 }
  0x53   : > { %v3368_v12 = vsel %vm1117_vm1, %v3020_v5, %v1116_v11  ;;  %v3439_v5 = vld [vmem:[%s3792_s4] ss:$0 sm:$0xff]  ;;  %s3798_s4 = sld [smem:[#allocation11_spill]] }
  0x64   : > { %1344 = vrot.lane.b32.xlu0 %v3359_v7, %s3136_s15 }
  0xa1   : > { %v1367_v27 = vpop.permute.xlu2 %1366 }
  0xa2   : > { %1379 = vmatpush.bf16.msrb.mxu2 %v1367_v27 }
  0xa9   : > { %v1365_v32 = vpop.permute.xlu2 %1364 }
  0xaa   : > { %1380 = vmatpush.bf16.msrb.mxu2 %v1365_v32  ;;  %v3449_v32 = vld [vmem:[%s1085_s16] sm:$0xff]  ;;  %s3794_s16 = sld [smem:[#allocation10_spill]] }
  0xbb   : > { %v1150_v13 = vpop.xlane.xlu0 %1149 }
  0xbc   : > { %v1151_v14 = vmul.f32 %v1150_v13, %v3368_v12 }
  0xbe   : > { %v1152_v15 = vsub.f32 %v1102_v0, %v1151_v14 }
  0xc0   : > { %v1153_v16 = vmul.f32 %v1152_v15, %v1152_v15 }
  0xc2   : > { %v1154_v17 = vsel %vm1108_vm0, %v1153_v16, 0.0 }
  0xc3   : > { %1155 = vadd.xlane.f32.xlu1 %v1154_v17  ;;  %v1111_v18 = vpop.xlane.xlu0 %1110 }
  0xc4   : > { %v1119_v19 = vmul.f32 %v3368_v12, %v1111_v18 }
  0xc6   : > { %v1120_v21 = vsub.f32 %v3354_v2, %v1119_v19 }
  0xc8   : > { %v1121_v22 = vmul.f32 %v1120_v21, %v1120_v21 }
  0xca   : > { %v1122_v24 = vsel %vm1108_vm0, %v1121_v22, 0.0 }
  0xcb   : > { %1123 = vadd.xlane.f32.xlu1 %v1122_v24 }
  0xd6   : > { %v1345_v31 = vpop.permute.xlu0 %1344 }
  0xd7   : > { %1357 = vmatpush.bf16.msrb.mxu1 %v1345_v31 }
  0xe4   : > { %1342 = vrot.lane.b32.xlu1 %v3365_v9, %s3136_s15 }
  0xec   : > { %1370 = vrot.lane.b32.xlu1 %v3404_v39, %s3136_s15 }
  0xf4   : > { %1348 = vrot.lane.b32.xlu1 %v3410_v46, %s3136_s15 }
  0xfc   : > { %1388 = vrot.lane.b32.xlu1 %v3394_v25, %s3136_s15 }
 0x136   : > { %v1156_v28 = vpop.xlane.xlu1 %1155 }
 0x137   : > { %v1157_v29 = vmul.f32 %v1156_v28, %v3368_v12 }
 0x139   : > { %v1158_v30 = vadd.f32 1e-05, %v1157_v29 }
 0x13b   : > { %3021 = vrsqrt.f32 %v1158_v30  ;;  %vm1165_vm3 = vweird.f32 %v1158_v30 }
 0x13e   : > { %v1124_v33 = vpop.xlane.xlu1 %1123 }
 0x13f   : > { %v1125_v34 = vmul.f32 %v1124_v33, %v3368_v12 }
 0x141   : > { %v3022_v35 = vpop.eup %3021  ;;  %v1126_v36 = vadd.f32 1e-05, %v1125_v34 }
 0x142   : > { %v1160_v37 = vmul.f32 %v3022_v35, %v1158_v30  ;;  %vm1166_vm2 = vweird.f32 %v3022_v35 }
 0x143   : > { %3023 = vrsqrt.f32 %v1126_v36  ;;  %vm1167_vm4 = vmor %vm1165_vm3, %vm1166_vm2  ;;  %vm1133_vm6 = vweird.f32 %v1126_v36 }
 0x144   : > { %v1161_v38 = vmul.f32 %v3022_v35, %v1160_v37 }
 0x146   : > { %v1162_v40 = vmul.f32 0.5, %v1161_v38 }
 0x148   : > { %v1163_v41 = vsub.f32 1.5, %v1162_v40 }
 0x149   : > { %v3024_v42 = vpop.eup %3023 }
 0x14a   : > { %v1164_v43 = vmul.f32 %v3022_v35, %v1163_v41  ;;  %v1128_v44 = vmul.f32 %v3024_v42, %v1126_v36  ;;  %vm1134_vm5 = vweird.f32 %v3024_v42 }
 0x14b   : > { %vm1135_vm7 = vmor %vm1133_vm6, %vm1134_vm5  ;;  %vm2577_vm6 = vcmask 523264  }
 0x14c   : > { %v1168_v47 = vsel %vm1167_vm4, %v3022_v35, %v1164_v43  ;;  %v1129_v48 = vmul.f32 %v3024_v42, %v1128_v44 }
 0x14d   : > { %v1169_v50 = vmul.f32 %v1168_v47, %v1152_v15 }
 0x14e   : > { %v1130_v51 = vmul.f32 0.5, %v1129_v48 }
 0x14f   : > { %v1173_v52 = vmul.f32 %v3001_v45, %v1169_v50 }
 0x150   : > { %v1131_v53 = vsub.f32 1.5, %v1130_v51 }
 0x151   : > { %v1177_v54 = vadd.f32 %v3002_v49, %v1173_v52 }
 0x152   : > { %v1132_v55 = vmul.f32 %v3024_v42, %v1131_v53 }
 0x153   : > { %v3415_v56 = vpack.c.bf16 %v1177_v54, %v1177_v54 }
 0x154   : > { %v1136_v58 = vsel %vm1135_vm7, %v3024_v42, %v1132_v55 }
 0x155   : > { %v1137_v59 = vmul.f32 %v1136_v58, %v1120_v21  ;;  %2798 = vmatmul.msk.bf16.vlgmr.msra.gmra.mxu1 %vm1108_vm0, %v3415_v56  ;;  %2807 = vmatmul.msk.bf16.vlgmr.msra.gmra.mxu2 %vm1108_vm0, %v3415_v56 }
 0x156   : > { %v1343_v61 = vpop.permute.xlu1 %1342 }
 0x157   : > { %v1141_v62 = vmul.f32 %v3003_v57, %v1137_v59  ;;  %1358 = vmatpush.bf16.msrb.mxu1 %v1343_v61 }
 0x159   : > { %v1145_v63 = vadd.f32 %v3004_v60, %v1141_v62 }
 0x15b   : > { %v3429_v0 = vpack.c.bf16 %v1145_v63, %v1145_v63  ;;  %v1341_v63 = vld [vmem:[%s3237_s24] sm:$0xf] }
 0x15d   : > { %2789 = vmatmul.msk.bf16.vlgmr.msra.gmra.mxu0 %vm1108_vm0, %v3429_v0 }
 0x15e   : > { %v1371_v22 = vpop.permute.xlu1 %1370 }
 0x165   : > { %2810 = vmatmul.msk.bf16.vlgmr.msrb.gmra.mxu1 %vm1108_vm0, %v3429_v0  ;;  %2811 = vmatmul.msk.bf16.vlgmr.msrb.gmra.mxu2 %vm1108_vm0, %v3415_v56 }
 0x166   : > { %v1349_v37 = vpop.permute.xlu1 %1348 }
 0x16e   : > { %v1389_v38 = vpop.permute.xlu1 %1388 }
 0x1d2   : > { %v1248_v1 = vpop.f32.mrf.mxu1 }
 0x1d3   : > { %v1249_v3 = vadd.f32 %v3404_v39, %v1248_v1  ;;  %v1486_v1 = vsel %vm1323_vm9, %v1341_v63, 0 }
 0x1d5   : > { %v1286_v4 = vpack.c.bf16 %v1249_v3, %v1249_v3 }
 0x1d7   : > { %v1292_v6 = vsel %vm1287_vm8, %v1286_v4, 0 }
 0x1d8   : > { %v1281_v8 = vpop.f32.mrf.mxu2  ;;  %1301 = vmatpush.bf16.xpose.msra.mxu3 %v1292_v6 }
 0x1d9   : > { %v1282_v10 = vadd.f32 %v3439_v5, %v1281_v8 }
 0x1da   : > { %v1212_v11 = vpop.f32.mrf.mxu0  ;;  %v1250_v13 = vpop.f32.mrf.mxu1 }
 0x1db   : > { %v1319_v14 = vpack.c.bf16 %v1282_v10, %v1282_v10  ;;  %v1213_v15 = vadd.f32 %v3410_v46, %v1212_v11 }
 0x1dd   : > { %v1285_v16 = vpack.c.bf16 %v1213_v15, %v1213_v15  ;;  %v1325_v17 = vsel %vm1323_vm9, %v1319_v14, 0 }
 0x1de   : > { %1334 = vmatpush.bf16.msrb.mxu0 %v1325_v17 }
 0x1df   : > { %2808 = vmatmul.msk.bf16.vlgmr.msra.gmra.mxu3 %vm1287_vm8, %v1285_v16 }
 0x1e0   : > { %v1283_v18 = vpop.f32.mrf.mxu2  ;;  %1401 = vmatpush.bf16.msrb.mxu3 %v1389_v38 }
 0x1e2   : > { %v1214_v19 = vpop.f32.mrf.mxu0  ;;  %v1360_v21 = vpop.f32.mrf.mxu1 }
 0x1e3   : > { %v1361_v60 = vadd.f32 %v1360_v21, %v1349_v37 }
 0x1e5   : > { %v1408_v62 = vpack.c.bf16 %v1361_v60, %v1361_v60 }
 0x1e8   : > { %v1382_v24 = vpop.f32.mrf.mxu2 }
 0x1e9   : > { %v1383_v27 = vadd.f32 %v1382_v24, %v1371_v22 }
 0x1ea   : > { %v1362_v28 = vpop.f32.mrf.mxu1 }
 0x1eb   : > { %v1409_v29 = vpack.c.bf16 %v1383_v27, %v1383_v27 }
 0x1ed   : > { %v1414_v30 = vsel %vm1287_vm8, %v1409_v29, 0 }
 0x1ee   : > { %1423 = vmatpush.bf16.xpose.msra.mxu0 %v1414_v30 }
 0x1f0   : > { %v1384_v31 = vpop.f32.mrf.mxu2 }
 0x262   : > { %v1303_v33 = vpop.f32.mrf.mxu3 }
 0x263   : > { %v1304_v34 = vadd.f32 %v1303_v33, %v3449_v32 }
 0x265   : > { %v1307_v35 = vsel %vm1287_vm8, %v1304_v34, -inf }
 0x266   : > { %1308 = vmax.xlane.f32.xlu2 %v1307_v35 }
 0x26a   : > { %v1305_v36 = vpop.f32.mrf.mxu3 }
 0x27e   : > { %1386 = vrot.lane.b32.xlu2 %v3398_v26, %s3136_s15 }
 0x286   : > { %1392 = vrot.lane.b32.xlu2 %v3439_v5, %s3136_s15 }
 0x28e   : > { %1523 = vrot.lane.b32.xlu2 %v3381_v23, %s3772_s18 }
 0x296   : > { %1503 = vrot.lane.b32.xlu2 %v3359_v7, %s3772_s18 }
 0x29e   : > { %1501 = vrot.lane.b32.xlu2 %v3365_v9, %s3772_s18 }
 0x2a6   : > { %1547 = vrot.lane.b32.xlu2 %v3394_v25, %s3772_s18 }
 0x2d9   : > { %v1309_v40 = vpop.xlane.xlu2 %1308 }
 0x2da   : > { %v1310_v41 = vsub.f32 %v1304_v34, %v1309_v40 }
 0x2dc   : > { %v1311_v42 = vmul.f32 1.442695, %v1310_v41 }
 0x2de   : > { %3025 = vpow2.f32 %v1311_v42 }
 0x2e1   : > { %v1387_v43 = vpop.permute.xlu2 %1386 }
 0x2e2   : > { %1402 = vmatpush.bf16.msrb.mxu3 %v1387_v43 }
 0x2e4   : > { %v3026_v44 = vpop.eup %3025 }
 0x2e5   : > { %2812 = vmatmul.msk.bf16.vlgmr.msrb.gmra.mxu3 %vm1108_vm0, %v3415_v56  ;;  %v1313_v45 = vsel %vm1287_vm8, %v3026_v44, 0.0 }
 0x2e6   : > { %1314 = vadd.xlane.f32.xlu0 %v1313_v45  ;;  %1495 = vmatpush.bf16.msra.mxu3 %v1486_v1 }
 0x2e9   : > { %v1393_v47 = vpop.permute.xlu2 %1392 }
 0x2f1   : > { %v3468_v48 = vpop.permute.xlu2 %1523 }
 0x2f9   : > { %v1504_v50 = vpop.permute.xlu2 %1503 }
 0x301   : > { %v1502_v54 = vpop.permute.xlu2 %1501 }
 0x359   : > { %v1315_v49 = vpop.xlane.xlu0 %1314 }
 0x35a   : > { %3027 = vrcp.f32 %v1315_v49 }
 0x360   : > { %v3028_v51 = vpop.eup %3027 }
 0x361   : > { %v1317_v52 = vmul.f32 %v3028_v51, %v3026_v44 }
 0x363   : > { %v1318_v53 = vpack.c.bf16 %v1317_v52, %v1317_v52 }
 0x365   : > { %2809 = vmatmul.msk.bf16.vlgmr.msrb.gmra.mxu0 %vm1287_vm8, %v1318_v53 }
 0x366   : > { %1516 = vmatpush.bf16.msrb.mxu0 %v1504_v50 }
 0x368   : > { %v1404_v55 = vpop.f32.mrf.mxu3 }
 0x369   : > { %v1405_v57 = vadd.f32 %v1404_v55, %v1393_v47 }
 0x36a   : > { %1517 = vmatpush.bf16.msrb.mxu0 %v1502_v54 }
 0x36b   : > { %v1441_v58 = vpack.c.bf16 %v1405_v57, %v1405_v57 }
 0x36d   : > { %v1446_v59 = vsel %vm1323_vm9, %v1441_v58, 0 }
 0x36e   : > { %1455 = vmatpush.bf16.msra.mxu1 %v1446_v59 }
 0x370   : > { %v1406_v61 = vpop.f32.mrf.mxu3 }
 0x375   : > { %2813 = vmatmul.msk.bf16.vlgmr.msra.gmra.mxu0 %vm1287_vm8, %v1408_v62 }
 0x385   : > { %2817 = vmatmul.msk.bf16.vlgmr.msrb.gmra.mxu0 %vm1108_vm0, %v3429_v0 }
 0x3e2   : > { %v1336_v3 = vpop.f32.mrf.mxu0 }
 0x3e3   : > { %v1340_v4 = vpack.c.bf16 %v1336_v3, %v1336_v3 }
 0x3e5   : > { %2816 = vmatmul.msk.bf16.vlgmr.msra.gmra.mxu3 %vm1287_vm8, %v1340_v4 }
 0x3ea   : > { %v1338_v6 = vpop.f32.mrf.mxu0 }
 0x3f2   : > { %v1425_v8 = vpop.f32.mrf.mxu0 }
 0x3f3   : > { %v1426_v10 = vadd.f32 %v1425_v8, %v3449_v32 }
 0x3f5   : > { %v1429_v11 = vsel %vm1287_vm8, %v1426_v10, -inf }
 0x3f6   : > { %1430 = vmax.xlane.f32.xlu1 %v1429_v11 }
 0x3fa   : > { %v1427_v13 = vpop.f32.mrf.mxu0 }
 0x402   : > { %v1519_v14 = vpop.f32.mrf.mxu0 }
 0x40a   : > { %v1521_v15 = vpop.f32.mrf.mxu0 }
 0x40f   : > { %1507 = vrot.lane.b32.xlu1 %v3410_v46, %s3772_s18 }
 0x417   : > { %1551 = vrot.lane.b32.xlu1 %v3439_v5, %s3772_s18 }
 0x41f   : > { %1666 = vrot.lane.b32.xlu1 %v3374_v20, %s3770_s1 }
 0x427   : > { %1664 = vrot.lane.b32.xlu1 %v3381_v23, %s3770_s1 }
 0x42f   : > { %1644 = vrot.lane.b32.xlu1 %v3359_v7, %s3770_s1 }
 0x437   : > { %1648 = vrot.lane.b32.xlu1 %v3410_v46, %s3770_s1 }
 0x43f   : > { %1688 = vrot.lane.b32.xlu1 %v3394_v25, %s3770_s1  ;;  %v1462_v25 = vld [vmem:[%s3237_s24 + $0x4] sm:$0xf] }
 0x447   : > { %1686 = vrot.lane.b32.xlu1 %v3398_v26, %s3770_s1 }
 0x44f   : > { %1692 = vrot.lane.b32.xlu1 %v3439_v5, %s3770_s1  ;;  %v1548_v5 = vpop.permute.xlu2 %1547 }
 0x468   : > { %v3484_v16 = vpop.f32.mrf.mxu3 }
 0x469   : > { %v1431_v17 = vpop.xlane.xlu1 %1430 }
 0x46a   : > { %v1432_v18 = vsub.f32 %v1426_v10, %v1431_v17  ;;  %v1621_v10 = vld [vmem:[%s3237_s24 + $0x8] sm:$0xf] }
 0x46b   : > { %v1626_v11 = vsel %vm1323_vm9, %v1621_v10, 0  ;;  %v3580_v10 = vld [vmem:[%s3795_s23] sm:$0xff] }
 0x46c   : > { %v1433_v19 = vmul.f32 1.442695, %v1432_v18 }
 0x46e   : > { %3029 = vpow2.f32 %v1433_v19 }
 0x470   : > { %v1499_v21 = vpop.f32.mrf.mxu3 }
 0x474   : > { %v3030_v22 = vpop.eup %3029 }
 0x475   : > { %v1435_v24 = vsel %vm1287_vm8, %v3030_v22, 0.0 }
 0x476   : > { %1436 = vadd.xlane.f32.xlu0 %v1435_v24 }
 0x481   : > { %v1508_v30 = vpop.permute.xlu1 %1507 }
 0x482   : > { %v1520_v42 = vadd.f32 %v1519_v14, %v1508_v30 }
 0x484   : > { %v1567_v45 = vpack.c.bf16 %v1520_v42, %v1520_v42 }
 0x489   : > { %v1552_v34 = vpop.permute.xlu1 %1551 }
 0x48a   : > { %1525 = vrot.lane.b32.xlu0 %v3374_v20, %s3772_s18 }
 0x491   : > { %v1667_v36 = vpop.permute.xlu1 %1666 }
 0x492   : > { %1529 = vrot.lane.b32.xlu0 %v3404_v39, %s3772_s18 }
 0x499   : > { %v1665_v44 = vpop.permute.xlu1 %1664 }
 0x49a   : > { %1545 = vrot.lane.b32.xlu0 %v3398_v26, %s3772_s18  ;;  %v1467_v26 = vsel %vm1323_vm9, %v1462_v25, 0  ;;  %s2906_s18 = sshll.u32 %s3823_s28, 4  ;;  %s3800_s28 = sld [smem:[#allocation5_spill]] }
 0x49b   : > { %1476 = vmatpush.bf16.msra.mxu2 %v1467_v26 }
 0x49f   : > { %1560 = vmatpush.bf16.msrb.mxu2 %v1548_v5 }
 0x4a1   : > { %v1645_v61 = vpop.permute.xlu1 %1644 }
 0x4e9   : > { %v1437_v20 = vpop.xlane.xlu0 %1436 }
 0x4ea   : > { %3031 = vrcp.f32 %v1437_v20 }
 0x4f0   : > { %v3032_v23 = vpop.eup %3031 }
 0x4f1   : > { %v1439_v7 = vmul.f32 %v3032_v23, %v3030_v22 }
 0x4f3   : > { %v1440_v27 = vpack.c.bf16 %v1439_v7, %v1439_v7 }
 0x4f5   : > { %2814 = vmatmul.msk.bf16.vlgmr.msra.gmra.mxu1 %vm1287_vm8, %v1440_v27 }
 0x4fc   : > { %v1526_v28 = vpop.permute.xlu0 %1525 }
 0x4fd   : > { %1538 = vmatpush.bf16.msrb.mxu1 %v1526_v28 }
 0x501   : > { %1539 = vmatpush.bf16.msrb.mxu1 %v3468_v48 }
 0x504   : > { %v1530_v46 = vpop.permute.xlu0 %1529 }
 0x505   : > { %2818 = vmatmul.msk.bf16.vlgmr.msrb.gmra.mxu1 %vm1108_vm0, %v3415_v56 }
 0x506   : > { %1635 = vmatpush.bf16.msra.mxu1 %v1626_v11 }
 0x50c   : > { %v1546_v29 = vpop.permute.xlu0 %1545 }
 0x50d   : > { %1561 = vmatpush.bf16.msrb.mxu2 %v1546_v29 }
 0x572   : > { %v1457_v31 = vpop.f32.mrf.mxu1 }
 0x573   : > { %v1461_v33 = vpack.c.bf16 %v1457_v31, %v1457_v31 }
 0x575   : > { %2815 = vmatmul.msk.bf16.vlgmr.msra.gmra.mxu2 %vm1287_vm8, %v1461_v33 }
 0x576   : > { %1657 = vmatpush.bf16.msra.mxu2 %v1645_v61  ;;  %v3557_v61 = vld [vmem:[%s3794_s16 + $0x8] sm:$0xff] }
 0x57a   : > { %v1459_v35 = vpop.f32.mrf.mxu1 }
 0x582   : > { %v1541_v37 = vpop.f32.mrf.mxu1 }
 0x583   : > { %v1542_v38 = vadd.f32 %v1541_v37, %v1530_v46 }
 0x585   : > { %v1568_v40 = vpack.c.bf16 %v1542_v38, %v1542_v38  ;;  %2819 = vmatmul.msk.bf16.vlgmr.msrb.gmra.mxu2 %vm1108_vm0, %v3415_v56 }
 0x587   : > { %v1573_v41 = vsel %vm1287_vm8, %v1568_v40, 0 }
 0x588   : > { %1582 = vmatpush.bf16.xpose.msrb.mxu3 %v1573_v41 }
 0x58a   : > { %v1543_v43 = vpop.f32.mrf.mxu1 }
 0x58f   : > { %2820 = vmatmul.msk.bf16.vlgmr.msrb.gmra.mxu3 %vm1287_vm8, %v1567_v45 }
 0x590   : > { %1679 = vmatpush.bf16.msra.mxu3 %v1667_v36 }
 0x594   : > { %1680 = vmatpush.bf16.msra.mxu3 %v1665_v44 }
 0x59f   : > { %2824 = vmatmul.msk.bf16.vlgmr.msra.gmra.mxu3 %vm1108_vm0, %v3415_v56 }
 0x5f8   : > { %v3520_v47 = vpop.f32.mrf.mxu2 }
 0x5f9   : > { %v1498_v31 = vadd.f32 %v3484_v16, %v3520_v47  ;;  %v1762_v16 = vld [vmem:[%s3237_s24 + $0xc] sm:$0xf] }
 0x5fa   : > { %v1767_v45 = vsel %vm1323_vm9, %v1762_v16, 0 }
 0x5fb   : > { %1776 = vmatpush.bf16.msrb.mxu3 %v1767_v45 }
 0x600   : > { %v1480_v48 = vpop.f32.mrf.mxu2 }
 0x608   : > { %v1563_v49 = vpop.f32.mrf.mxu2 }
 0x609   : > { %v1564_v50 = vadd.f32 %v1563_v49, %v1552_v34 }
 0x60b   : > { %v1600_v51 = vpack.c.bf16 %v1564_v50, %v1564_v50 }
 0x60d   : > { %v1605_v52 = vsel %vm1323_vm9, %v1600_v51, 0 }
 0x60e   : > { %1614 = vmatpush.bf16.msra.mxu0 %v1605_v52 }
 0x610   : > { %v1565_v53 = vpop.f32.mrf.mxu2 }
 0x611   : > { %v3008_v53 = vld [vmem:[%s3793_s26] ss:$0 sm:$0xff]  ;;  %s3797_s26 = sld [smem:[#allocation13_spill]] }
 0x612   : > { %v1584_v54 = vpop.f32.mrf.mxu3 }
 0x613   : > { %v1585_v55 = vadd.f32 %v1584_v54, %v3449_v32 }
 0x615   : > { %v1588_v57 = vsel %vm1287_vm8, %v1585_v55, -inf }
 0x616   : > { %1589 = vmax.xlane.f32.xlu2 %v1588_v57 }
 0x61a   : > { %v1586_v58 = vpop.f32.mrf.mxu3 }
 0x622   : > { %v1682_v59 = vpop.f32.mrf.mxu3 }
 0x62a   : > { %v1684_v60 = vpop.f32.mrf.mxu3 }
 0x62e   : > { %1642 = vrot.lane.b32.xlu2 %v3365_v9, %s3770_s1  ;;  %v1649_v9 = vpop.permute.xlu1 %1648 }
 0x636   : > { %v1689_v8 = vpop.permute.xlu1 %1688 }
 0x637   : > { %1701 = vmatpush.bf16.msrb.mxu0 %v1689_v8 }
 0x63e   : > { %v1687_v13 = vpop.permute.xlu1 %1686 }
 0x63f   : > { %1702 = vmatpush.bf16.msrb.mxu0 %v1687_v13 }
 0x646   : > { %v1693_v28 = vpop.permute.xlu1 %1692 }
 0x689   : > { %v1590_v62 = vpop.xlane.xlu2 %1589 }
 0x68a   : > { %v1591_v63 = vsub.f32 %v1585_v55, %v1590_v62  ;;  %v3560_v62 = vld [vmem:[%s3795_s23 + $0x8] sm:$0xff] }
 0x68c   : > { %v1592_v1 = vmul.f32 1.442695, %v1591_v63 }
 0x68e   : > { %3033 = vpow2.f32 %v1592_v1 }
 0x691   : > { %v1643_v3 = vpop.permute.xlu2 %1642 }
 0x692   : > { %1658 = vmatpush.bf16.msra.mxu2 %v1643_v3 }
 0x694   : > { %v3034_v4 = vpop.eup %3033 }
 0x695   : > { %2823 = vmatmul.msk.bf16.vlgmr.msra.gmra.mxu2 %vm1108_vm0, %v3429_v0  ;;  %v1594_v6 = vsel %vm1287_vm8, %v3034_v4, 0.0 }
 0x696   : > { %1595 = vadd.xlane.f32.xlu0 %v1594_v6 }
 0x6aa   : > { %1670 = vrot.lane.b32.xlu0 %v3404_v39, %s3770_s1  ;;  %s3796_s1 = sld [smem:[#allocation2_spill]] }
 0x6b0   : > { %s1081_s3 = scalar_lea.vmem %s3796_s1, %s2906_s18  ;;  %s3802_s18 = sld [smem:[#allocation15_spill]] }
 0x6b1   : > { %v1104_v8 = vld [vmem:[%s1081_s3 + $0x8] sm:$0xff]  ;;  %s3803_s1 = smov 112  }
 0x709   : > { %v1596_v14 = vpop.xlane.xlu0 %1595 }
 0x70a   : > { %3035 = vrcp.f32 %v1596_v14 }
 0x710   : > { %v3036_v15 = vpop.eup %3035 }
 0x711   : > { %v1598_v17 = vmul.f32 %v3036_v15, %v3034_v4 }
 0x713   : > { %v1599_v0 = vpack.c.bf16 %v1598_v17, %v1598_v17  ;;  %v3590_v17 = vld [vmem:[%s3797_s26] ss:$0 sm:$0xff]  ;;  %s3804_s26 = smov 104  }
 0x715   : > { %2821 = vmatmul.msk.bf16.vlgmr.msra.gmra.mxu0 %vm1287_vm8, %v1599_v0 }
 0x716   : > { %1852 = vmatpush.bf16.msra.mxu0 %v3557_v61 }
 0x718   : > { %v1660_v18 = vpop.f32.mrf.mxu2 }
 0x719   : > { %v1661_v19 = vadd.f32 %v1660_v18, %v1649_v9  ;;  %v1103_v9 = vld [vmem:[%s1081_s3] sm:$0xff]  ;;  %s3799_s3 = sld [smem:[#allocation4_spill]] }
 0x71a   : > { %v3582_v11 = vpack.c.bf16 %v1104_v8, %v1103_v9 }
 0x71b   : > { %v1708_v26 = vpack.c.bf16 %v1661_v19, %v1661_v19 }
 0x71c   : > { %v1671_v21 = vpop.permute.xlu0 %1670 }
 0x71d   : > { %v1683_v39 = vadd.f32 %v1682_v59, %v1671_v21  ;;  %v3596_v21 = vld [vmem:[%s3798_s4] ss:$0 sm:$0xff]  ;;  %s3801_s4 = sld [smem:[#allocation14_spill]] }
 0x71f   : > { %v1709_v22 = vpack.c.bf16 %v1683_v39, %v1683_v39 }
 0x720   : > { %v1662_v24 = vpop.f32.mrf.mxu2 }
 0x721   : > { %v1714_v20 = vsel %vm1287_vm8, %v1709_v22, 0 }
 0x722   : > { %1723 = vmatpush.bf16.xpose.msrb.mxu1 %v1714_v20 }
 0x725   : > { %2825 = vmatmul.msk.bf16.vlgmr.msrb.gmra.mxu0 %vm1108_vm0, %v3415_v56 }
 0x792   : > { %v1616_v23 = vpop.f32.mrf.mxu0 }
 0x793   : > { %v1620_v7 = vpack.c.bf16 %v1616_v23, %v1616_v23 }
 0x795   : > { %2822 = vmatmul.msk.bf16.vlgmr.msra.gmra.mxu1 %vm1287_vm8, %v1620_v7 }
 0x796   : > { %1888 = vmatpush.bf16.msra.mxu1 %v3560_v62 }
 0x79a   : > { %v1618_v27 = vpop.f32.mrf.mxu0  ;;  %1889 = vmatpush.bf16.msra.mxu1 %v3580_v10 }
 0x79b   : > { %v3009_v27 = vld [vmem:[%s3799_s3] ss:$0 sm:$0xff]  ;;  %s3806_s3 = sld [smem:[#allocation17_spill]] }
 0x7a2   : > { %v1704_v25 = vpop.f32.mrf.mxu0 }
 0x7a3   : > { %v1705_v46 = vadd.f32 %v1704_v25, %v1693_v28 }
 0x7a5   : > { %v1741_v5 = vpack.c.bf16 %v1705_v46, %v1705_v46  ;;  %2826 = vmatmul.msk.bf16.vlgmr.msrb.gmra.mxu1 %vm1287_vm8, %v1708_v26  ;;  %v3010_v26 = vld [vmem:[%s3800_s28] ss:$0 sm:$0xff]  ;;  %s3807_s28 = sld [smem:[#allocation18_spill]] }
 0x7a7   : > { %v1746_v29 = vsel %vm1323_vm9, %v1741_v5, 0 }
 0x7a8   : > { %1755 = vmatpush.bf16.msrb.mxu2 %v1746_v29 }
 0x7aa   : > { %v1706_v30 = vpop.f32.mrf.mxu0 }
 0x7b5   : > { %2846 = vmatmul.msk.bf16.vlgmr.msra.gmra.mxu1 %vm1108_vm0, %v3582_v11 }
 0x812   : > { %v1637_v56 = vpop.f32.mrf.mxu1 }
 0x813   : > { %v1641_v33 = vadd.f32 %v1637_v56, %v1498_v31 }
 0x81a   : > { %v1639_v34 = vpop.f32.mrf.mxu1 }
 0x822   : > { %v1725_v35 = vpop.f32.mrf.mxu1 }
 0x823   : > { %v1726_v36 = vadd.f32 %v1725_v35, %v3449_v32 }
 0x825   : > { %v1729_v37 = vsel %vm1287_vm8, %v1726_v36, -inf }
 0x826   : > { %1730 = vmax.xlane.f32.xlu0 %v1729_v37 }
 0x82a   : > { %v1727_v38 = vpop.f32.mrf.mxu1 }
 0x832   : > { %v1891_v30 = vpop.f32.mrf.mxu1 }
 0x833   : > { %v1892_v31 = vadd.f32 %v3590_v17, %v1891_v30 }
 0x83a   : > { %v1893_v56 = vpop.f32.mrf.mxu1 }
 0x899   : > { %v1731_v40 = vpop.xlane.xlu0 %1730 }
 0x89a   : > { %v1732_v41 = vsub.f32 %v1726_v36, %v1731_v40 }
 0x89c   : > { %v1733_v42 = vmul.f32 1.442695, %v1732_v41 }
 0x89e   : > { %3037 = vpow2.f32 %v1733_v42 }
 0x8a4   : > { %v3038_v43 = vpop.eup %3037 }
 0x8a5   : > { %v1735_v44 = vsel %vm1287_vm8, %v3038_v43, 0.0 }
 0x8a6   : > { %1736 = vadd.xlane.f32.xlu2 %v1735_v44  ;;  %v3620_v44 = vld [vmem:[%s3801_s4] sm:$0xff] }
 0x8be   : > { %2007 = vrot.lane.b32.xlu2 %v3560_v62, %s3136_s15 }
 0x919   : > { %v1737_v47 = vpop.xlane.xlu2 %1736 }
 0x91a   : > { %3039 = vrcp.f32 %v1737_v47 }
 0x920   : > { %v3040_v32 = vpop.eup %3039 }
 0x921   : > { %v1739_v48 = vmul.f32 %v3040_v32, %v3038_v43  ;;  %v2008_v13 = vpop.permute.xlu2 %2007  ;;  %v3616_v43 = vld [vmem:[%s3801_s4 + $0x8] sm:$0xff] }
 0x922   : > { %1922 = vmatpush.bf16.msra.mxu2 %v3616_v43 }
 0x923   : > { %v1740_v49 = vpack.c.bf16 %v1739_v48, %v1739_v48 }
 0x925   : > { %2827 = vmatmul.msk.bf16.vlgmr.msrb.gmra.mxu2 %vm1287_vm8, %v1740_v49 }
 0x926   : > { %1923 = vmatpush.bf16.msra.mxu2 %v3620_v44 }
 0x92a   : > { %2020 = vmatpush.bf16.msrb.mxu2 %v2008_v13 }
 0x935   : > { %2855 = vmatmul.msk.bf16.vlgmr.msra.gmra.mxu2 %vm1108_vm0, %v3582_v11 }
 0x9a8   : > { %v1757_v50 = vpop.f32.mrf.mxu2 }
 0x9a9   : > { %v1761_v51 = vpack.c.bf16 %v1757_v50, %v1757_v50 }
 0x9ab   : > { %2828 = vmatmul.msk.bf16.vlgmr.msrb.gmra.mxu3 %vm1287_vm8, %v1761_v51  ;;  %v3637_v51 = vld [vmem:[%s3802_s18] ss:$0 sm:$0xff]  ;;  %s3808_s18 = smov %s3807_s28 }
 0x9b0   : > { %v1759_v52 = vpop.f32.mrf.mxu2 }
 0x9b8   : > { %v1925_v48 = vpop.f32.mrf.mxu2 }
 0xa2e   : > { %v1778_v54 = vpop.f32.mrf.mxu3 }
 0xa2f   : > { %v1782_v55 = vadd.f32 %v1778_v54, %v1641_v33  ;;  %v1894_v33 = vadd.f32 %v3590_v17, %v1893_v56  ;;  %v1927_v54 = vpop.f32.mrf.mxu2 }
 0xa31   : > { %v1787_v57 = vadd.f32 %v3008_v53, %v1782_v55  ;;  %v1931_v34 = vpack.c.bf16 %v1894_v33, %v1892_v31  ;;  %v1926_v53 = vadd.f32 %v3637_v51, %v1925_v48  ;;  %v1928_v55 = vadd.f32 %v3637_v51, %v1927_v54 }
 0xa33   : > { %v3552_v58 = vadd.f32 %v1787_v57, %v3354_v2  ;;  %v3569_v2 = vld [vmem:[%s3794_s16] sm:$0xff]  ;;  %v1936_v35 = vsel %vm1287_vm8, %v1931_v34, 0  ;;  %v1964_v57 = vpack.c.bf16 %v1928_v55, %v1926_v53 }
 0xa34   : > { %1853 = vmatpush.bf16.msra.mxu0 %v3569_v2  ;;  %1983 = vrot.lane.b32.xlu2 %v3569_v2, %s3136_s15 }
 0xa35   : > { %v1791_v59 = vsel %vm1108_vm0, %v3552_v58, 0.0  ;;  %1945 = vmatpush.bf16.xpose.msra.mxu3 %v1936_v35 }
 0xa36   : > { %1792 = vadd.xlane.f32.xlu1 %v1791_v59  ;;  %v1780_v60 = vpop.f32.mrf.mxu3 }
 0xa38   : > { %1975 = vmatpush.bf16.msrb.mxu0 %v1964_v57 }
 0xa4f   : > { %1985 = vrot.lane.b32.xlu1 %v3557_v61, %s3136_s15 }
 0xa57   : > { %2011 = vrot.lane.b32.xlu1 %v3590_v17, %s3136_s15 }
 0xa5f   : > { %1989 = vrot.lane.b32.xlu1 %v3596_v21, %s3136_s15 }
 0xa67   : > { %2030 = vrot.lane.b32.xlu1 %v3616_v43, %s3136_s15 }
 0xa6f   : > { %2028 = vrot.lane.b32.xlu1 %v3620_v44, %s3136_s15 }
 0xa8e   : > { %v1984_v15 = vpop.permute.xlu2 %1983 }
 0xaa9   : > { %v1793_v63 = vpop.xlane.xlu1 %1792 }
 0xaaa   : > { %v1794_v1 = vmul.f32 %v1793_v63, %v3368_v12 }
 0xaac   : > { %v1795_v3 = vsub.f32 %v3552_v58, %v1794_v1 }
 0xaae   : > { %v1796_v4 = vmul.f32 %v1795_v3, %v1795_v3 }
 0xab0   : > { %v1797_v6 = vsel %vm1108_vm0, %v1796_v4, 0.0 }
 0xab1   : > { %1798 = vadd.xlane.f32.xlu0 %v1797_v6 }
 0xac1   : > { %v1986_v14 = vpop.permute.xlu1 %1985 }
 0xac2   : > { %1998 = vmatpush.bf16.msrb.mxu1 %v1986_v14 }
 0xac5   : > { %2005 = vrot.lane.b32.xlu0 %v3580_v10, %s3136_s15 }
 0xac6   : > { %1999 = vmatpush.bf16.msrb.mxu1 %v1984_v15 }
 0xac9   : > { %v2012_v1 = vpop.permute.xlu1 %2011 }
 0xad1   : > { %v1990_v13 = vpop.permute.xlu1 %1989 }
 0xad9   : > { %v2031_v14 = vpop.permute.xlu1 %2030 }
 0xada   : > { %2043 = vmatpush.bf16.msrb.mxu3 %v2031_v14 }
 0xb24   : > { %v1799_v0 = vpop.xlane.xlu0 %1798 }
 0xb25   : > { %v1800_v18 = vmul.f32 %v1799_v0, %v3368_v12  ;;  %v2029_v0 = vpop.permute.xlu1 %2028 }
 0xb26   : > { %2044 = vmatpush.bf16.msrb.mxu3 %v2029_v0 }
 0xb27   : > { %v1801_v19 = vadd.f32 1e-05, %v1800_v18 }
 0xb29   : > { %3041 = vrsqrt.f32 %v1801_v19  ;;  %vm1808_vm11 = vweird.f32 %v1801_v19 }
 0xb2f   : > { %v3042_v39 = vpop.eup %3041 }
 0xb30   : > { %v1803_v22 = vmul.f32 %v3042_v39, %v1801_v19  ;;  %vm1809_vm10 = vweird.f32 %v3042_v39 }
 0xb31   : > { %vm1810_vm12 = vmor %vm1808_vm11, %vm1809_vm10 }
 0xb32   : > { %v1804_v24 = vmul.f32 %v3042_v39, %v1803_v22 }
 0xb34   : > { %v1805_v20 = vmul.f32 0.5, %v1804_v24 }
 0xb36   : > { %v1806_v23 = vsub.f32 1.5, %v1805_v20 }
 0xb37   : > { %v2006_v16 = vpop.permute.xlu0 %2005 }
 0xb38   : > { %v1807_v7 = vmul.f32 %v3042_v39, %v1806_v23  ;;  %2021 = vmatpush.bf16.msrb.mxu2 %v2006_v16 }
 0xb3a   : > { %v1811_v28 = vsel %vm1810_vm12, %v3042_v39, %v1807_v7 }
 0xb3b   : > { %v1812_v25 = vmul.f32 %v1811_v28, %v1795_v3  ;;  %2859 = vmatmul.msk.bf16.vlgmr.msrb.gmra.mxu2 %vm1108_vm0, %v3582_v11 }
 0xb3d   : > { %v1816_v46 = vmul.f32 %v3009_v27, %v1812_v25 }
 0xb3f   : > { %v1820_v5 = vadd.f32 %v3010_v26, %v1816_v46 }
 0xb41   : > { %v3602_v29 = vpack.c.bf16 %v1820_v5, %v1820_v5 }
 0xb43   : > { %2837 = vmatmul.msk.bf16.vlgmr.msra.gmra.mxu0 %vm1108_vm0, %v3602_v29  ;;  %2858 = vmatmul.msk.bf16.vlgmr.msrb.gmra.mxu1 %vm1108_vm0, %v3602_v29 }
 0xbbe   : > { %v2023_v63 = vpop.f32.mrf.mxu2 }
 0xbbf   : > { %v2024_v3 = vadd.f32 %v2023_v63, %v2012_v1 }
 0xbc0   : > { %v1855_v36 = vpop.f32.mrf.mxu0  ;;  %v3611_v37 = vpop.f32.mrf.mxu1 }
 0xbc1   : > { %v1856_v38 = vadd.f32 %v3596_v21, %v1855_v36  ;;  %v2002_v39 = vadd.f32 %v3611_v37, %v1990_v13 }
 0xbc3   : > { %v1930_v40 = vpack.c.bf16 %v1856_v38, %v1856_v38  ;;  %v2051_v22 = vpack.c.bf16 %v2002_v39, %v2002_v39 }
 0xbc5   : > { %2856 = vmatmul.msk.bf16.vlgmr.msra.gmra.mxu3 %vm1287_vm8, %v1930_v40 }
 0xbc6   : > { %v2025_v4 = vpop.f32.mrf.mxu2 }
 0xbc7   : > { %v2026_v6 = vadd.f32 %v2025_v4, %v2012_v1 }
 0xbc8   : > { %v1857_v41 = vpop.f32.mrf.mxu0  ;;  %v2003_v42 = vpop.f32.mrf.mxu1 }
 0xbc9   : > { %v2052_v9 = vpack.c.bf16 %v2026_v6, %v2024_v3 }
 0xbcb   : > { %v2057_v8 = vsel %vm1287_vm8, %v2052_v9, 0 }
 0xbcc   : > { %2066 = vmatpush.bf16.xpose.msra.mxu0 %v2057_v8 }
 0xbd5   : > { %2860 = vmatmul.msk.bf16.vlgmr.msrb.gmra.mxu3 %vm1108_vm0, %v3582_v11 }
 0xc48   : > { %v1947_v45 = vpop.f32.mrf.mxu3 }
 0xc49   : > { %v1952_v47 = vsel %vm1951_vm13, %v1947_v45, -inf }
 0xc4a   : > { %1953 = vmax.xlane.f32.xlu0 %v1952_v47 }
 0xc50   : > { %v1949_v32 = vpop.f32.mrf.mxu3 }
 0xc58   : > { %v2046_v46 = vpop.f32.mrf.mxu3 }
 0xc5e   : > { %2165 = vrot.lane.b32.xlu0 %v3560_v62, %s3803_s1 }
 0xc60   : > { %v2048_v5 = vpop.f32.mrf.mxu3 }
 0xc66   : > { %2163 = vrot.lane.b32.xlu0 %v3580_v10, %s3803_s1 }
 0xcbd   : > { %v1954_v49 = vpop.xlane.xlu0 %1953 }
 0xcbe   : > { %v1955_v50 = vsub.f32 %v1947_v45, %v1954_v49 }
 0xcc0   : > { %v1956_v52 = vmul.f32 1.442695, %v1955_v50 }
 0xcc2   : > { %3043 = vpow2.f32 %v1956_v52 }
 0xcc8   : > { %v3044_v59 = vpop.eup %3043 }
 0xcc9   : > { %v1958_v60 = vsel %vm1951_vm13, %v3044_v59, 0.0 }
 0xcca   : > { %1959 = vadd.xlane.f32.xlu2 %v1958_v60 }
 0xcd0   : > { %v2166_v35 = vpop.permute.xlu0 %2165 }
 0xce2   : > { %2034 = vrot.lane.b32.xlu2 %v3637_v51, %s3136_s15  ;;  %s3805_s15 = sld [smem:[#allocation16_spill]] }
 0xce8   : > { %v1982_v24 = vld [vmem:[%s3805_s15] sm:$0xf]  ;;  %v2102_v32 = vld [vmem:[%s3805_s15 + $0x4] sm:$0xf] }
 0xce9   : > { %v2126_v20 = vsel %vm1323_vm9, %v1982_v24, 0  ;;  %v2107_v48 = vsel %vm1323_vm9, %v2102_v32, 0 }
 0xcea   : > { %2143 = vrot.lane.b32.xlu2 %v3557_v61, %s3803_s1  ;;  %2135 = vmatpush.bf16.msra.mxu3 %v2126_v20 }
 0xceb   : > { %2116 = vmatpush.bf16.msra.mxu2 %v2107_v48 }
 0xcf2   : > { %2169 = vrot.lane.b32.xlu2 %v3590_v17, %s3803_s1 }
 0xcfa   : > { %2186 = vrot.lane.b32.xlu2 %v3620_v44, %s3803_s1 }
 0xd02   : > { %2305 = vrot.lane.b32.xlu2 %v3560_v62, %s3804_s26 }
 0xd3d   : > { %v1960_v15 = vpop.xlane.xlu2 %1959 }
 0xd3e   : > { %3045 = vrcp.f32 %v1960_v15 }
 0xd44   : > { %v3046_v18 = vpop.eup %3045 }
 0xd45   : > { %v1962_v19 = vmul.f32 %v3046_v18, %v3044_v59  ;;  %v2035_v56 = vpop.permute.xlu2 %2034 }
 0xd46   : > { %v2047_v33 = vadd.f32 %v2046_v46, %v2035_v56  ;;  %v2049_v34 = vadd.f32 %v2048_v5, %v2035_v56 }
 0xd47   : > { %v1963_v62 = vpack.c.bf16 %v1962_v19, %v1962_v19 }
 0xd48   : > { %v2084_v36 = vpack.c.bf16 %v2049_v34, %v2047_v33 }
 0xd49   : > { %2857 = vmatmul.msk.bf16.vlgmr.msrb.gmra.mxu0 %vm1951_vm13, %v1963_v62 }
 0xd4a   : > { %2095 = vmatpush.bf16.msra.mxu1 %v2084_v36 }
 0xd4d   : > { %v2144_v41 = vpop.permute.xlu2 %2143 }
 0xd4e   : > { %2178 = vmatpush.bf16.msrb.mxu1 %v2166_v35  ;;  %2156 = vmatpush.bf16.msrb.mxu0 %v2144_v41 }
 0xd55   : > { %v2170_v49 = vpop.permute.xlu2 %2169 }
 0xd59   : > { %2861 = vmatmul.msk.bf16.vlgmr.msra.gmra.mxu0 %vm1287_vm8, %v2051_v22 }
 0xd5d   : > { %v2187_v53 = vpop.permute.xlu2 %2186 }
 0xdc6   : > { %v1977_v23 = vpop.f32.mrf.mxu0 }
 0xdc7   : > { %v1981_v7 = vpack.c.bf16 %v1977_v23, %v1977_v23 }
 0xdc9   : > { %2864 = vmatmul.msk.bf16.vlgmr.msra.gmra.mxu3 %vm1287_vm8, %v1981_v7 }
 0xdce   : > { %v1979_v27 = vpop.f32.mrf.mxu0 }
 0xdd6   : > { %v2068_v28 = vpop.f32.mrf.mxu0 }
 0xdd7   : > { %v2072_v25 = vsel %vm1951_vm13, %v2068_v28, -inf }
 0xdd8   : > { %2073 = vmax.xlane.f32.xlu1 %v2072_v25 }
 0xdde   : > { %v2070_v26 = vpop.f32.mrf.mxu0 }
 0xdf1   : > { %2147 = vrot.lane.b32.xlu1 %v3596_v21, %s3803_s1 }
 0xdf9   : > { %2303 = vrot.lane.b32.xlu1 %v3580_v10, %s3804_s26 }
 0xe01   : > { %2192 = vrot.lane.b32.xlu1 %v3637_v51, %s3803_s1 }
 0xe09   : > { %2283 = vrot.lane.b32.xlu1 %v3557_v61, %s3804_s26 }
 0xe11   : > { %2281 = vrot.lane.b32.xlu1 %v3569_v2, %s3804_s26 }
 0xe19   : > { %2287 = vrot.lane.b32.xlu1 %v3596_v21, %s3804_s26  ;;  %v2164_v21 = vpop.permute.xlu0 %2163 }
 0xe1a   : > { %2179 = vmatpush.bf16.msrb.mxu1 %v2164_v21 }
 0xe21   : > { %2326 = vrot.lane.b32.xlu1 %v3620_v44, %s3804_s26 }
 0xe4b   : > { %v2074_v30 = vpop.xlane.xlu1 %2073 }
 0xe4c   : > { %v2075_v31 = vsub.f32 %v2068_v28, %v2074_v30  ;;  %v3676_v10 = vpop.f32.mrf.mxu3 }
 0xe4e   : > { %v2076_v61 = vmul.f32 1.442695, %v2075_v31 }
 0xe50   : > { %3047 = vpow2.f32 %v2076_v61 }
 0xe54   : > { %v2139_v37 = vpop.f32.mrf.mxu3 }
 0xe56   : > { %v3048_v38 = vpop.eup %3047 }
 0xe57   : > { %v2078_v40 = vsel %vm1951_vm13, %v3048_v38, 0.0 }
 0xe58   : > { %2079 = vadd.xlane.f32.xlu0 %v2078_v40 }
 0xe6c   : > { %2141 = vrot.lane.b32.xlu0 %v3569_v2, %s3803_s1  ;;  %v2148_v2 = vpop.permute.xlu1 %2147 }
 0xe74   : > { %2188 = vrot.lane.b32.xlu0 %v3616_v43, %s3803_s1  ;;  %v2304_v50 = vpop.permute.xlu1 %2303  ;;  %s3809_s1 = sld [smem:[#allocation6_spill]] }
 0xe7c   : > { %v2193_v54 = vpop.permute.xlu1 %2192 }
 0xe84   : > { %v2284_v55 = vpop.permute.xlu1 %2283 }
 0xe8c   : > { %v2282_v60 = vpop.permute.xlu1 %2281 }
 0xecb   : > { %v2080_v42 = vpop.xlane.xlu0 %2079 }
 0xecc   : > { %3049 = vrcp.f32 %v2080_v42 }
 0xed2   : > { %v3050_v44 = vpop.eup %3049 }
 0xed3   : > { %v2082_v16 = vmul.f32 %v3050_v44, %v3048_v38 }
 0xed5   : > { %v2083_v45 = vpack.c.bf16 %v2082_v16, %v2082_v16  ;;  %v2288_v16 = vpop.permute.xlu1 %2287 }
 0xed7   : > { %2862 = vmatmul.msk.bf16.vlgmr.msra.gmra.mxu1 %vm1951_vm13, %v2083_v45 }
 0xedd   : > { %v2327_v32 = vpop.permute.xlu1 %2326 }
 0xede   : > { %v2142_v47 = vpop.permute.xlu0 %2141 }
 0xedf   : > { %2157 = vmatpush.bf16.msrb.mxu0 %v2142_v47 }
 0xee2   : > { %2865 = vmatmul.msk.bf16.vlgmr.msrb.gmra.mxu0 %vm1108_vm0, %v3602_v29 }
 0xee6   : > { %v2189_v52 = vpop.permute.xlu0 %2188 }
 0xee7   : > { %2866 = vmatmul.msk.bf16.vlgmr.msrb.gmra.mxu1 %vm1108_vm0, %v3582_v11  ;;  %2201 = vmatpush.bf16.msrb.mxu2 %v2189_v52 }
 0xeeb   : > { %2202 = vmatpush.bf16.msrb.mxu2 %v2187_v53 }
 0xf54   : > { %v2097_v57 = vpop.f32.mrf.mxu1 }
 0xf55   : > { %v2101_v59 = vpack.c.bf16 %v2097_v57, %v2097_v57 }
 0xf57   : > { %2863 = vmatmul.msk.bf16.vlgmr.msra.gmra.mxu2 %vm1287_vm8, %v2101_v59 }
 0xf58   : > { %2296 = vmatpush.bf16.msra.mxu2 %v2284_v55 }
 0xf5c   : > { %v2099_v63 = vpop.f32.mrf.mxu1  ;;  %2297 = vmatpush.bf16.msra.mxu2 %v2282_v60 }
 0xf5f   : > { %v2159_v1 = vpop.f32.mrf.mxu0 }
 0xf60   : > { %v2160_v15 = vadd.f32 %v2159_v1, %v2148_v2 }
 0xf62   : > { %v2209_v0 = vpack.c.bf16 %v2160_v15, %v2160_v15 }
 0xf64   : > { %v2181_v3 = vpop.f32.mrf.mxu1 }
 0xf65   : > { %v2182_v9 = vadd.f32 %v2181_v3, %v2170_v49 }
 0xf67   : > { %v2161_v4 = vpop.f32.mrf.mxu0  ;;  %2867 = vmatmul.msk.bf16.vlgmr.msrb.gmra.mxu2 %vm1108_vm0, %v3582_v11 }
 0xf6c   : > { %v2183_v6 = vpop.f32.mrf.mxu1 }
 0xf6d   : > { %v2184_v8 = vadd.f32 %v2183_v6, %v2170_v49 }
 0xf6f   : > { %v2210_v13 = vpack.c.bf16 %v2184_v8, %v2182_v9  ;;  %v2400_v8 = vld [vmem:[%s3805_s15 + $0xc] sm:$0xf] }
 0xf71   : > { %v2215_v14 = vsel %vm1287_vm8, %v2210_v13, 0  ;;  %v2405_v13 = vsel %vm1323_vm9, %v2400_v8, 0 }
 0xf72   : > { %2224 = vmatpush.bf16.xpose.msrb.mxu3 %v2215_v14 }
 0xf77   : > { %2871 = vmatmul.msk.bf16.vlgmr.msra.gmra.mxu2 %vm1108_vm0, %v3602_v29  ;;  %v2306_v29 = vpop.permute.xlu2 %2305 }
 0xf79   : > { %2868 = vmatmul.msk.bf16.vlgmr.msrb.gmra.mxu3 %vm1287_vm8, %v2209_v0 }
 0xf7a   : > { %2318 = vmatpush.bf16.msra.mxu3 %v2306_v29 }
 0xf7e   : > { %2319 = vmatpush.bf16.msra.mxu3 %v2304_v50 }
 0xf82   : > { %2414 = vmatpush.bf16.msrb.mxu3 %v2405_v13 }
 0xf89   : > { %2872 = vmatmul.msk.bf16.vlgmr.msra.gmra.mxu3 %vm1108_vm0, %v3582_v11 }
 0xfda   : > { %v2118_v18 = vpop.f32.mrf.mxu2 }
 0xfdb   : > { %v2138_v48 = vadd.f32 %v3676_v10, %v2118_v18 }
 0xfe2   : > { %v2120_v19 = vpop.f32.mrf.mxu2 }
 0xfea   : > { %v2204_v62 = vpop.f32.mrf.mxu2 }
 0xfeb   : > { %v2205_v39 = vadd.f32 %v2204_v62, %v2193_v54 }
 0xff2   : > { %v2206_v22 = vpop.f32.mrf.mxu2 }
 0xff3   : > { %v2207_v24 = vadd.f32 %v2206_v22, %v2193_v54  ;;  %v3014_v22 = vld [vmem:[%s3806_s3] ss:$0 sm:$0xff]  ;;  %s3811_s3 = sshll.u32 %s3348_s22, 3 }
 0xff5   : > { %v2242_v20 = vpack.c.bf16 %v2207_v24, %v2205_v39 }
 0xff7   : > { %2253 = vmatpush.bf16.msra.mxu0 %v2242_v20 }
 0xffa   : > { %v2299_v23 = vpop.f32.mrf.mxu2 }
 0xffb   : > { %v2300_v45 = vadd.f32 %v2299_v23, %v2288_v16 }
 0xffc   : > { %v2226_v7 = vpop.f32.mrf.mxu3 }
 0xffd   : > { %v2230_v27 = vsel %vm1951_vm13, %v2226_v7, -inf  ;;  %v2349_v47 = vpack.c.bf16 %v2300_v45, %v2300_v45 }
 0xffe   : > { %2231 = vmax.xlane.f32.xlu0 %v2230_v27 }
0x1002   : > { %v2301_v28 = vpop.f32.mrf.mxu2 }
0x1004   : > { %v2228_v25 = vpop.f32.mrf.mxu3 }
0x100c   : > { %v2321_v36 = vpop.f32.mrf.mxu3 }
0x1012   : > { %2309 = vrot.lane.b32.xlu0 %v3590_v17, %s3804_s26  ;;  %v2260_v17 = vld [vmem:[%s3805_s15 + $0x8] sm:$0xf] }
0x1013   : > { %v2265_v56 = vsel %vm1323_vm9, %v2260_v17, 0 }
0x1014   : > { %2274 = vmatpush.bf16.msra.mxu1 %v2265_v56  ;;  %v2323_v21 = vpop.f32.mrf.mxu3 }
0x1071   : > { %v2232_v26 = vpop.xlane.xlu0 %2231 }
0x1072   : > { %v2233_v46 = vsub.f32 %v2226_v7, %v2232_v26 }
0x1074   : > { %v2234_v5 = vmul.f32 1.442695, %v2233_v46 }
0x1076   : > { %3051 = vpow2.f32 %v2234_v5 }
0x107c   : > { %v3052_v30 = vpop.eup %3051 }
0x107d   : > { %v2236_v31 = vsel %vm1951_vm13, %v3052_v30, 0.0 }
0x107e   : > { %2237 = vadd.xlane.f32.xlu2 %v2236_v31  ;;  %v2919_v31 = vld [vmem:[%s3808_s18] sm:$0xff] }
0x1084   : > { %v2310_v37 = vpop.permute.xlu0 %2309 }
0x1085   : > { %v2322_v38 = vadd.f32 %v2321_v36, %v2310_v37  ;;  %v2324_v40 = vadd.f32 %v2323_v21, %v2310_v37  ;;  %v3015_v21 = vld [vmem:[%s3809_s1] ss:$0 sm:$0xff] }
0x1096   : > { %2328 = vrot.lane.b32.xlu2 %v3616_v43, %s3804_s26  ;;  %v2350_v43 = vpack.c.bf16 %v2324_v40, %v2322_v38 }
0x1098   : > { %v2355_v41 = vsel %vm1287_vm8, %v2350_v43, 0 }
0x1099   : > { %2364 = vmatpush.bf16.xpose.msrb.mxu1 %v2355_v41 }
0x109e   : > { %2332 = vrot.lane.b32.xlu2 %v3637_v51, %s3804_s26  ;;  %s3810_s26 = sld [smem:[#allocation7_spill]] }
0x10a4   : > { %v3016_v40 = vld [vmem:[%s3810_s26] ss:$0 sm:$0xff] }
0x10f1   : > { %v2238_v33 = vpop.xlane.xlu2 %2237 }
0x10f2   : > { %3053 = vrcp.f32 %v2238_v33 }
0x10f8   : > { %v3054_v34 = vpop.eup %3053 }
0x10f9   : > { %v2240_v35 = vmul.f32 %v3054_v34, %v3052_v30  ;;  %v2329_v2 = vpop.permute.xlu2 %2328  ;;  %v2920_v30 = vld [vmem:[%s3807_s28 + $0x8] sm:$0xff]  ;;  %s1099_s28 = scalar_lea.vmem %s3307_s14, %s3811_s3 }
0x10fa   : > { %2341 = vmatpush.bf16.msrb.mxu0 %v2329_v2 }
0x10fb   : > { %v2241_v61 = vpack.c.bf16 %v2240_v35, %v2240_v35 }
0x10fd   : > { %2869 = vmatmul.msk.bf16.vlgmr.msra.gmra.mxu0 %vm1951_vm13, %v2241_v61 }
0x10fe   : > { %2342 = vmatpush.bf16.msrb.mxu0 %v2327_v32 }
0x1101   : > { %v2333_v59 = vpop.permute.xlu2 %2332 }
0x1102   : > { %2489 = vmatpush.bf16.msra.mxu0 %v2920_v30 }
0x1106   : > { %2490 = vmatpush.bf16.msra.mxu0 %v2919_v31 }
0x110d   : > { %2873 = vmatmul.msk.bf16.vlgmr.msrb.gmra.mxu0 %vm1108_vm0, %v3582_v11 }
0x117a   : > { %v2255_v51 = vpop.f32.mrf.mxu0 }
0x117b   : > { %v2259_v42 = vpack.c.bf16 %v2255_v51, %v2255_v51 }
0x117d   : > { %2870 = vmatmul.msk.bf16.vlgmr.msra.gmra.mxu1 %vm1287_vm8, %v2259_v42  ;;  %v3017_v42 = vld [vmem:[%s3292_s8] ss:$0 sm:$0xff] }
0x1182   : > { %v2257_v44 = vpop.f32.mrf.mxu0 }
0x118a   : > { %v2344_v57 = vpop.f32.mrf.mxu0 }
0x118b   : > { %v2345_v60 = vadd.f32 %v2344_v57, %v2333_v59 }
0x118d   : > { %2874 = vmatmul.msk.bf16.vlgmr.msrb.gmra.mxu1 %vm1287_vm8, %v2349_v47 }
0x1192   : > { %v2346_v1 = vpop.f32.mrf.mxu0 }
0x1193   : > { %v2347_v4 = vadd.f32 %v2346_v1, %v2333_v59 }
0x1195   : > { %v2382_v6 = vpack.c.bf16 %v2347_v4, %v2345_v60 }
0x1197   : > { %2393 = vmatpush.bf16.msrb.mxu2 %v2382_v6 }
0x11fa   : > { %v2276_v49 = vpop.f32.mrf.mxu1 }
0x11fb   : > { %v2280_v50 = vadd.f32 %v2276_v49, %v2138_v48  ;;  %v2924_v48 = vld [vmem:[%s3297_s13 + $0x18] sm:$0xff] }
0x11fc   : > { %2585 = vmatpush.bf16.msra.mxu1 %v2924_v48 }
0x1202   : > { %v2278_v52 = vpop.f32.mrf.mxu1 }
0x120a   : > { %v2366_v53 = vpop.f32.mrf.mxu1 }
0x120b   : > { %v2370_v54 = vsel %vm1951_vm13, %v2366_v53, -inf }
0x120c   : > { %2371 = vmax.xlane.f32.xlu0 %v2370_v54  ;;  %v2923_v54 = vld [vmem:[%s3297_s13 + $0x10] sm:$0xff] }
0x120d   : > { %2586 = vmatpush.bf16.msra.mxu1 %v2923_v54 }
0x1212   : > { %v2368_v55 = vpop.f32.mrf.mxu1 }
0x127f   : > { %v2372_v63 = vpop.xlane.xlu0 %2371 }
0x1280   : > { %v2373_v3 = vsub.f32 %v2366_v53, %v2372_v63  ;;  %v2922_v63 = vld [vmem:[%s3297_s13 + $0x8] sm:$0xff] }
0x1281   : > { %2587 = vmatpush.bf16.msra.mxu1 %v2922_v63 }
0x1282   : > { %v2374_v10 = vmul.f32 1.442695, %v2373_v3 }
0x1284   : > { %3055 = vpow2.f32 %v2374_v10  ;;  %v2921_v10 = vld [vmem:[%s3297_s13] sm:$0xff] }
0x1285   : > { %2588 = vmatpush.bf16.msra.mxu1 %v2921_v10 }
0x128a   : > { %v3056_v11 = vpop.eup %3055 }
0x128b   : > { %v2376_v9 = vsel %vm1951_vm13, %v3056_v11, 0.0 }
0x128c   : > { %2377 = vadd.xlane.f32.xlu1 %v2376_v9 }
0x12ff   : > { %v2378_v14 = vpop.xlane.xlu1 %2377 }
0x1300   : > { %3057 = vrcp.f32 %v2378_v14 }
0x1306   : > { %v3058_v15 = vpop.eup %3057 }
0x1307   : > { %v2380_v0 = vmul.f32 %v3058_v15, %v3056_v11 }
0x1309   : > { %v2381_v18 = vpack.c.bf16 %v2380_v0, %v2380_v0 }
0x130b   : > { %2875 = vmatmul.msk.bf16.vlgmr.msrb.gmra.mxu2 %vm1951_vm13, %v2381_v18 }
0x138e   : > { %v2395_v19 = vpop.f32.mrf.mxu2 }
0x138f   : > { %v2399_v62 = vpack.c.bf16 %v2395_v19, %v2395_v19 }
0x1391   : > { %2876 = vmatmul.msk.bf16.vlgmr.msrb.gmra.mxu3 %vm1287_vm8, %v2399_v62 }
0x1396   : > { %v2397_v39 = vpop.f32.mrf.mxu2 }
0x1414   : > { %v2416_v24 = vpop.f32.mrf.mxu3 }
0x1415   : > { %v2420_v20 = vadd.f32 %v2416_v24, %v2280_v50 }
0x1417   : > { %v2425_v23 = vadd.f32 %v3014_v22, %v2420_v20 }
0x1419   : > { %v3724_v7 = vadd.f32 %v2425_v23, %v3552_v58 }
0x141b   : > { %v2429_v27 = vsel %vm1108_vm0, %v3724_v7, 0.0 }
0x141c   : > { %2430 = vadd.xlane.f32.xlu2 %v2429_v27  ;;  %v2418_v28 = vpop.f32.mrf.mxu3 }
0x148f   : > { %v2431_v25 = vpop.xlane.xlu2 %2430 }
0x1490   : > { %v2432_v29 = vmul.f32 %v2431_v25, %v3368_v12 }
0x1492   : > { %v2433_v26 = vsub.f32 %v3724_v7, %v2432_v29 }
0x1494   : > { %v2434_v46 = vmul.f32 %v2433_v26, %v2433_v26 }
0x1496   : > { %v2435_v5 = vsel %vm1108_vm0, %v2434_v46, 0.0 }
0x1497   : > { %2436 = vadd.xlane.f32.xlu0 %v2435_v5 }
0x150a   : > { %v2437_v58 = vpop.xlane.xlu0 %2436 }
0x150b   : > { %v2438_v17 = vmul.f32 %v2437_v58, %v3368_v12 }
0x150d   : > { %v2439_v56 = vadd.f32 1e-05, %v2438_v17  ;;  %v3018_v17 = vld [vmem:[%s3302_s19] ss:$0 sm:$0xff] }
0x150f   : > { %3059 = vrsqrt.f32 %v2439_v56  ;;  %vm2446_vm15 = vweird.f32 %v2439_v56 }
0x1515   : > { %v3060_v33 = vpop.eup %3059 }
0x1516   : > { %v2441_v34 = vmul.f32 %v3060_v33, %v2439_v56  ;;  %vm2447_vm14 = vweird.f32 %v3060_v33 }
0x1517   : > { %vm2448_vm1 = vmor %vm2446_vm15, %vm2447_vm14 }
0x1518   : > { %v2442_v35 = vmul.f32 %v3060_v33, %v2441_v34 }
0x151a   : > { %v2443_v61 = vmul.f32 0.5, %v2442_v35 }
0x151c   : > { %v2444_v36 = vsub.f32 1.5, %v2443_v61 }
0x151e   : > { %v2445_v37 = vmul.f32 %v3060_v33, %v2444_v36 }
0x1520   : > { %v2449_v38 = vsel %vm2448_vm1, %v3060_v33, %v2445_v37 }
0x1521   : > { %v2450_v43 = vmul.f32 %v2449_v38, %v2433_v26 }
0x1523   : > { %v2454_v41 = vmul.f32 %v3015_v21, %v2450_v43 }
0x1525   : > { %v2458_v51 = vadd.f32 %v3016_v40, %v2454_v41 }
0x1527   : > { %v2459_v12 = vpack.c.bf16 %v2458_v51, %v2458_v51 }
0x1529   : > { %2885 = vmatmul.msk.bf16.vlgmr.msra.gmra.mxu0 %vm1108_vm0, %v2459_v12 }
0x15a6   : > { %v2492_v44 = vpop.f32.mrf.mxu0 }
0x15a7   : > { %v2493_v16 = vadd.f32 %v3017_v42, %v2492_v44 }
0x15a9   : > { %v2497_v45 = vmul.f32 0.70710677, %v2493_v16  ;;  %v2496_v5 = vmul.f32 0.5, %v2493_v16 }
0x15ab   : > { %v2498_v47 = vmul.f32 %v2497_v45, %v2497_v45 }
0x15ad   : > { %v2499_v2 = vmin.f32 %v2498_v47, 16.0 }
0x15ae   : > { %v2494_v32 = vpop.f32.mrf.mxu0 }
0x15af   : > { %v2500_v49 = vmul.f32 2.1237322e-06, %v2499_v2  ;;  %v2511_v50 = vmul.f32 3.8918573e-05, %v2499_v2 }
0x15b1   : > { %v2501_v52 = vadd.f32 0.00028619796, %v2500_v49  ;;  %v2512_v53 = vadd.f32 0.001143296, %v2511_v50 }
0x15b3   : > { %v2502_v55 = vmul.f32 %v2501_v52, %v2499_v2  ;;  %v2513_v57 = vmul.f32 %v2512_v53, %v2499_v2 }
0x15b5   : > { %v2514_v59 = vadd.f32 0.014752088, %v2513_v57  ;;  %v2503_v60 = vadd.f32 0.0036580483, %v2502_v55 }
0x15b7   : > { %v2515_v1 = vmul.f32 %v2514_v59, %v2499_v2  ;;  %v2504_v4 = vmul.f32 %v2503_v60, %v2499_v2 }
0x15b9   : > { %v2516_v3 = vadd.f32 0.112945676, %v2515_v1  ;;  %v2505_v9 = vadd.f32 0.05243302, %v2504_v4 }
0x15bb   : > { %v2517_v6 = vmul.f32 %v2516_v3, %v2499_v2  ;;  %v2506_v14 = vmul.f32 %v2505_v9, %v2499_v2 }
0x15bd   : > { %v2518_v11 = vadd.f32 0.4994258, %v2517_v6  ;;  %v2507_v15 = vadd.f32 0.18741608, %v2506_v14 }
0x15bf   : > { %v2519_v8 = vmul.f32 %v2518_v11, %v2499_v2  ;;  %v2508_v18 = vmul.f32 %v2507_v15, %v2499_v2 }
0x15c1   : > { %v2520_v13 = vadd.f32 1.0, %v2519_v8  ;;  %v2509_v22 = vadd.f32 1.1283791, %v2508_v18 }
0x15c3   : > { %3061 = vrcp.f32 %v2520_v13  ;;  %v2532_v39 = vand.u32 2147483648, %v2520_v13  ;;  %v2530_v20 = vand.u32 2147483647, %v2520_v13  ;;  %vm2526_vm3 = vweird.f32 %v2520_v13 }
0x15c4   : > { %v2510_v28 = vmul.f32 %v2509_v22, %v2497_v45 }
0x15c5   : > { %v2533_v27 = vor.u32 1.1754944e-38, %v2532_v39  ;;  %vm2531_vm5 = vcmp.eq.f32.partialorder %v2530_v20, 8.507059e+37 }
0x15c9   : > { %v3062_v0 = vpop.eup %3061 }
0x15ca   : > { %v2522_v19 = vmul.f32 %v3062_v0, %v2520_v13  ;;  %vm2527_vm2 = vweird.f32 %v3062_v0 }
0x15cb   : > { %vm2528_vm4 = vmor %vm2526_vm3, %vm2527_vm2 }
0x15cc   : > { %v2523_v62 = vsub.f32 1.0, %v2522_v19 }
0x15ce   : > { %v2524_v24 = vmul.f32 %v3062_v0, %v2523_v62 }
0x15d0   : > { %v2525_v23 = vadd.f32 %v3062_v0, %v2524_v24 }
0x15d2   : > { %v2529_v25 = vsel %vm2528_vm4, %v3062_v0, %v2525_v23 }
0x15d3   : > { %v2534_v29 = vsel %vm2531_vm5, %v2533_v27, %v2529_v25 }
0x15d4   : > { %v2535_v26 = vmul.f32 %v2534_v29, %v2510_v28 }
0x15d6   : > { %v2886_v46 = vclamps-f32 %v2535_v26, 1.0 }
0x15d8   : > { %v2538_v30 = vadd.f32 1.0, %v2886_v46 }
0x15da   : > { %v2539_v31 = vmul.f32 %v2538_v30, %v2496_v5 }
0x15dc   : > { %v2540_v58 = vpack.c.bf16 %v2539_v31, %v2539_v31 }
0x15de   : > { %2903 = vmatmul.msk.bf16.vlgmr.msra.gmra.mxu1 %vm2577_vm6, %v2540_v58 }
0x165b   : > { %v2590_v56 = vpop.f32.mrf.mxu1 }
0x165c   : > { %v2591_v33 = vadd.f32 %v3018_v17, %v2590_v56 }
0x165e   : > { %v2594_v34 = vadd.f32 %v2591_v33, %v3724_v7 }
0x1660   : > { %2595 = vst.msk [vmem:[%s1099_s28] sm:$0xff] %vm1108_vm0, %v2594_v34 }
0x1663   : > { %v2592_v35 = vpop.f32.mrf.mxu1 }
0x1664 PF: > { %s75_s10 = sadd.s32 1, %s3101_s10   ;;  %s3812_s28 = smov %s3093_s2 }
0x1665   : > { %p72_p7 = scmp.ge.s32.totalorder %s75_s10, 6   ;;  %s3813_s1 = smov %s3097_s7 }
0x1666   : > { %s3814_s2 = smov %s3817_s0  ;;  %s3815_s7 = smov %s3821_s11 }
0x1667   :  { %74 = sbr.rel (!%p72_p7) target bundleno = 56 (0x38), region = 225 }

</bundles_post_ra>
